<compile_context>
chip_gen: v5e
topology: v5e:2x2
jax: 0.10.0
libtpu: 0.0.40
codegen_flags: <defaults>
</compile_context>

<pallas_src>
import jax
import jax.numpy as jnp
import numpy as np
from jax.experimental import pallas as pl
from jax.experimental.pallas import tpu as pltpu

EPS = 1e-5                      # nn.BatchNorm2d default eps
LANE = 128                      # TPU lane width (pad Cout to a multiple of this)
VMEM_LIMIT = 48 * 1024 * 1024   # explicit scoped-VMEM limit; safe on v7x (64 MiB/TC)
STEP_BUDGET = 12 * 1024 * 1024  # per-grid-step working-set budget


def _round_up(x, m):
    return ((x + m - 1) // m) * m


# --------------------------------------------------------------------------- kernels
def _conv_body(win, w_ref, b_ref, y_ref, stat_ref):
    """Shared 3x3-conv body on a (th+2, Wp, Cin) window.

    win     : (th+2, Wp, Cin)   zero-padded input window (compute dtype, e.g. bf16)
    w_ref   : (9*Cin, Coutp)    tap-major (ky, kx, cin) x coutp weight matrix
    b_ref   : (1, Coutp)        bias (f32)
    y_ref   : (1, th, W2, Coutp) pre-BN conv output tile
    stat_ref: (1, 1, 2, Coutp)  per-tile (sum, sum-of-squares) from the f32 accumulator
    """
    th, w2, coutp = y_ref.shape[1], y_ref.shape[2], y_ref.shape[3]
    cin = win.shape[-1]

    # 9 unrolled MXU GEMMs accumulated in f32 (no im2col / lane-concat temp).
    acc = jnp.zeros((th * w2, coutp), jnp.float32)
    for k in range(9):
        dy, dx = k // 3, k % 3
        tap = win[dy:dy + th, dx:dx + w2, :].reshape(th * w2, cin)
        acc = acc + jnp.dot(tap, w_ref[k * cin:(k + 1) * cin, :],
                            preferred_element_type=jnp.float32)
    acc = acc + b_ref[...]                                  # (th*W2, Coutp), f32

    y_ref[...] = acc.reshape(1, th, w2, coutp).astype(y_ref.dtype)

    s1 = jnp.sum(acc, axis=0, keepdims=True)                # (1, Coutp)
    s2 = jnp.sum(acc * acc, axis=0, keepdims=True)          # (1, Coutp)
    stat_ref[...] = jnp.concatenate([s1, s2], axis=0).reshape(1, 1, 2, coutp)


def conv_kernel_full(x_ref, w_ref, b_ref, y_ref, stat_ref):
    """Whole-image-per-step path: x_ref is (1, H2+2, Wp, Cin); no halo, no concat."""
    _conv_body(x_ref[0], w_ref, b_ref, y_ref, stat_ref)


def conv_kernel_halo(xa_ref, xb_ref, w_ref, b_ref, y_ref, stat_ref):
    """Row-block fallback: xa_ref (1, th, Wp, Cin) rows + xb_ref (1, 2, Wp, Cin) halo."""
    _conv_body(jnp.concatenate([xa_ref[0], xb_ref[0]], axis=0),
               w_ref, b_ref, y_ref, stat_ref)


def bn_relu_kernel(x_ref, scale_ref, shift_ref, o_ref):
    """Per-channel affine (BN with precomputed batch stats) + ReLU."""
    x = x_ref[...].astype(jnp.float32)
    s = scale_ref[...].reshape(1, 1, 1, -1)
    t = shift_ref[...].reshape(1, 1, 1, -1)
    o_ref[...] = jnp.maximum(x * s + t, 0.0).astype(o_ref.dtype)


def bn_relu_pad_kernel(x_ref, scale_ref, shift_ref, o_ref):
    """Affine + ReLU, emitting the zero-padded NHWC tensor consumed by the next conv.

    x_ref: (1, H2, W2, C)   pre-BN conv output (bf16)
    o_ref: (1, H2+2, W2+2, C) padded activation (bf16) -- fuses the pad pass.
    """
    h, w, c = x_ref.shape[1], x_ref.shape[2], x_ref.shape[3]
    x = x_ref[0].astype(jnp.float32)                        # (H2, W2, C)
    s = scale_ref[...].reshape(1, 1, c)
    t = shift_ref[...].reshape(1, 1, c)
    z = jnp.maximum(x * s + t, 0.0).astype(o_ref.dtype)     # (H2, W2, C)
    zc = jnp.zeros((h, 1, c), o_ref.dtype)
    zr = jnp.zeros((1, w + 2, c), o_ref.dtype)
    zp = jnp.concatenate([zc, z, zc], axis=1)               # width pad
    zp = jnp.concatenate([zr, zp, zr], axis=0)               # height pad
    o_ref[...] = zp.reshape(1, h + 2, w + 2, c)              # single dense store


# --------------------------------------------------------------------------- helpers
def _pick_tile_rows(n, h2, w2, cinp, coutp, itemsize=2, budget=STEP_BUDGET):
    """Largest even divisor of h2 whose per-step working set (double-buffered streams,
    weights, in-kernel temps) fits the budget."""
    assert h2 % 2 == 0, "spatial size after pooling must be even"
    wp = w2 + 2

    def step_bytes(th):
        xin = (th + 2) * wp * cinp * itemsize          # input window block
        yout = th * w2 * coutp * itemsize              # pre-BN output block
        acc = th * w2 * coutp * 4                      # f32 accumulator
        taps = 3 * th * w2 * cinp * itemsize           # transient tap slices
        wts = 9 * cinp * coutp * itemsize              # weight matrix
        return 2 * (xin + yout) + acc + taps + 2 * wts  # 2x: double buffering

    best = 2
    for th in range(2, h2 + 1, 2):
        if h2 % th == 0 and step_bytes(th) <= budget:
            best = th
    # Keep >= 2 parallel grid steps (dual TensorCores on v7x) when batch == 1.
    if n == 1 and best == h2 and h2 >= 4:
        smaller = [t for t in range(2, h2, 2) if h2 % t == 0 and step_bytes(t) <= budget]
        if smaller:
            best = smaller[-1]
    return best


def _prep_weight(w, cinp, coutp, dtype):
    """(Cout, Cin, 3, 3) -> (9*cinp, coutp) tap-major matrix, zero-padded channels."""
    co, ci, kh, kw = w.shape
    wt = jnp.transpose(w, (2, 3, 1, 0))                      # (3, 3, Cin, Cout)
    wt = jnp.pad(wt, ((0, 0), (0, 0), (0, cinp - ci), (0, coutp - co)))
    return wt.reshape(kh * kw * cinp, coutp).astype(dtype)


def _pad_vec(v, cp):
    return jnp.pad(v.astype(jnp.float32), (0, cp - v.shape[0]))


def _conv3x3_stats(xpad, wmat, bias2d, th, out_dtype=jnp.bfloat16):
    """3x3 conv (pad already applied) over NHWC -> (pre-BN output, per-tile BN stats).

    xpad: (N, H2+2, W2+2, Cinp)  zero-padded input in compute dtype.
    """
    N, Hp, Wp, Cinp = xpad.shape
    H2, W2 = Hp - 2, Wp - 2
    Kc, Coutp = wmat.shape
    nb = H2 // th

    flops = 2 * N * H2 * W2 * Kc * Coutp
    bytes_acc = int(xpad.size) * xpad.dtype.itemsize \
        + int(wmat.size) * wmat.dtype.itemsize \
        + N * H2 * W2 * Coutp * jnp.dtype(out_dtype).itemsize
    cost = pl.CostEstimate(flops=int(flops), transcendentals=0,
                           bytes_accessed=int(bytes_acc))

    if nb == 1:
        # Whole padded image per step: no halo stream, no row concat.
        return pl.pallas_call(
            conv_kernel_full,
            out_shape=(jax.ShapeDtypeStruct((N, H2, W2, Coutp), out_dtype),
                       jax.ShapeDtypeStruct((N, 1, 2, Coutp), jnp.float32)),
            grid=(N,),
            in_specs=[
                pl.BlockSpec((1, Hp, Wp, Cinp), lambda n: (n, 0, 0, 0)),
                pl.BlockSpec((Kc, Coutp), lambda n: (0, 0)),
                pl.BlockSpec((1, Coutp), lambda n: (0, 0)),
            ],
            out_specs=(
                pl.BlockSpec((1, H2, W2, Coutp), lambda n: (n, 0, 0, 0)),
                pl.BlockSpec((1, 1, 2, Coutp), lambda n: (n, 0, 0, 0)),
            ),
            compiler_params=pltpu.CompilerParams(
                dimension_semantics=("parallel",),
                vmem_limit_bytes=VMEM_LIMIT),
            cost_estimate=cost,
        )(xpad, wmat, bias2d)

    # Row-block fallback (very large images): main rows + 2-row halo view of same array.
    half = th // 2
    xpad2 = jnp.pad(xpad, ((0, 0), (0, th - 2), (0, 0), (0, 0)))  # height -> multiple of th
    return pl.pallas_call(
        conv_kernel_halo,
        out_shape=(jax.ShapeDtypeStruct((N, H2, W2, Coutp), out_dtype),
                   jax.ShapeDtypeStruct((N, nb, 2, Coutp), jnp.float32)),
        grid=(N, nb),
        in_specs=[
            pl.BlockSpec((1, th, Wp, Cinp), lambda n, i: (n, i, 0, 0)),
            pl.BlockSpec((1, 2, Wp, Cinp), lambda n, i: (n, (i + 1) * half, 0, 0)),
            pl.BlockSpec((Kc, Coutp), lambda n, i: (0, 0)),
            pl.BlockSpec((1, Coutp), lambda n, i: (0, 0)),
        ],
        out_specs=(
            pl.BlockSpec((1, th, W2, Coutp), lambda n, i: (n, i, 0, 0)),
            pl.BlockSpec((1, 1, 2, Coutp), lambda n, i: (n, i, 0, 0)),
        ),
        compiler_params=pltpu.CompilerParams(
            dimension_semantics=("parallel", "parallel"),
            vmem_limit_bytes=VMEM_LIMIT),
        cost_estimate=cost,
    )(xpad2, xpad2, wmat, bias2d)


def _bn_affine(stats, gamma_p, beta_p, count):
    """Reduce per-tile (sum, sumsq) -> per-channel scale/shift (tiny XLA reduction)."""
    s = jnp.sum(stats, axis=(0, 1))                       # (2, C)
    mean = s[0] / count
    var = jnp.maximum(s[1] / count - mean * mean, 0.0)    # biased var (training-mode BN)
    inv = jax.lax.rsqrt(var + EPS)
    scale = gamma_p * inv
    shift = beta_p - mean * scale
    return (scale.reshape(1, -1).astype(jnp.float32),
            shift.reshape(1, -1).astype(jnp.float32))


def _bn_relu_apply_pad(y, scale, shift):
    """BN affine + ReLU, emitting the padded bf16 NHWC tensor for the next conv."""
    N, H2, W2, C = y.shape
    return pl.pallas_call(
        bn_relu_pad_kernel,
        out_shape=jax.ShapeDtypeStruct((N, H2 + 2, W2 + 2, C), y.dtype),
        grid=(N,),
        in_specs=[
            pl.BlockSpec((1, H2, W2, C), lambda n: (n, 0, 0, 0)),
            pl.BlockSpec((1, C), lambda n: (0, 0)),
            pl.BlockSpec((1, C), lambda n: (0, 0)),
        ],
        out_specs=pl.BlockSpec((1, H2 + 2, W2 + 2, C), lambda n: (n, 0, 0, 0)),
        compiler_params=pltpu.CompilerParams(
            dimension_semantics=("parallel",), vmem_limit_bytes=VMEM_LIMIT),
    )(y, scale, shift)


def _bn_relu_apply(y, scale, shift):
    """Final BN affine + ReLU (f32 output, whole image per grid step)."""
    N, H2, W2, C = y.shape
    return pl.pallas_call(
        bn_relu_kernel,
        out_shape=jax.ShapeDtypeStruct((N, H2, W2, C), jnp.float32),
        grid=(N,),
        in_specs=[
            pl.BlockSpec((1, H2, W2, C), lambda n: (n, 0, 0, 0)),
            pl.BlockSpec((1, C), lambda n: (0, 0)),
            pl.BlockSpec((1, C), lambda n: (0, 0)),
        ],
        out_specs=pl.BlockSpec((1, H2, W2, C), lambda n: (n, 0, 0, 0)),
        compiler_params=pltpu.CompilerParams(
            dimension_semantics=("parallel",), vmem_limit_bytes=VMEM_LIMIT),
    )(y, scale, shift)


# --------------------------------------------------------------------------- forward
def down_block_forward(x_nchw, params, compute_dtype=jnp.bfloat16):
    """Down_block forward: MaxPool2d(2) + (Conv3x3+BN+ReLU) x 2.  NCHW in/out, f32."""
    w1, b1, g1, be1, w2, b2, g2, be2 = params
    N, Cin, H, W = x_nchw.shape
    Cout = w1.shape[0]
    assert H % 2 == 0 and W % 2 == 0
    H2, W2 = H // 2, W // 2
    Coutp = _round_up(Cout, LANE)       # lane-dense channel dim for all kernel outputs

    # MaxPool2d(2) fused with the NCHW->NHWC relayout (single XLA pass of glue).
    xpool = jnp.max(x_nchw.reshape(N, Cin, H2, 2, W2, 2), axis=(3, 5))
    xnhwc = jnp.transpose(xpool, (0, 2, 3, 1))                     # (N, H2, W2, Cin)
    xpad = jnp.pad(xnhwc, ((0, 0), (1, 1), (1, 1), (0, 0))).astype(compute_dtype)

    wm1 = _prep_weight(w1, Cin, Coutp, compute_dtype)
    bb1 = _pad_vec(b1, Coutp).reshape(1, Coutp)
    wm2 = _prep_weight(w2, Coutp, Coutp, compute_dtype)            # a1 carries Coutp channels
    bb2 = _pad_vec(b2, Coutp).reshape(1, Coutp)

    itemsize = jnp.dtype(compute_dtype).itemsize
    th = _pick_tile_rows(N, H2, W2, max(Cin, Coutp), Coutp, itemsize)
    M = N * H2 * W2

    # Conv1 + BN1 (batch stats) + ReLU  (apply fused with the padding for conv2)
    y1, st1 = _conv3x3_stats(xpad, wm1, bb1, th, out_dtype=compute_dtype)
    sc1, sh1 = _bn_affine(st1, _pad_vec(g1, Coutp), _pad_vec(be1, Coutp), M)
    a1pad = _bn_relu_apply_pad(y1, sc1, sh1)                       # (N, H2+2, W2+2, Coutp) bf16

    # Conv2 + BN2 (batch stats) + ReLU
    y2, st2 = _conv3x3_stats(a1pad, wm2, bb2, th, out_dtype=compute_dtype)
    sc2, sh2 = _bn_affine(st2, _pad_vec(g2, Coutp), _pad_vec(be2, Coutp), M)
    out = _bn_relu_apply(y2, sc2, sh2)                             # (N, H2, W2, Coutp) f32

    return jnp.transpose(out[..., :Cout], (0, 3, 1, 2))           # back to NCHW


# --------------------------------------------------------------------------- reference
def reference_forward(x, params):
    """Pure-JAX f32 NCHW reference mirroring the PyTorch module (training-mode BN)."""
    w1, b1, g1, beta1, w2, b2, g2, beta2 = params
    N, Cin, H, W = x.shape
    H2, W2 = H // 2, W // 2
    xp = jnp.max(x.reshape(N, Cin, H2, 2, W2, 2), axis=(3, 5))

    def conv_bn_relu(inp, w, b, g, beta):
        Co = w.shape[0]
        pad = jnp.pad(inp, ((0, 0), (0, 0), (1, 1), (1, 1)))
        z = jnp.zeros((N, Co, H2, W2), jnp.float32)
        for dy in range(3):
            for dx in range(3):
                z = z + jnp.einsum('nchw,oc->nohw',
                                   pad[:, :, dy:dy + H2, dx:dx + W2], w[:, :, dy, dx])
        z = z + b[None, :, None, None]
        mean = jnp.mean(z, axis=(0, 2, 3), keepdims=True)
        var = jnp.var(z, axis=(0, 2, 3), keepdims=True)
        z = (z - mean) / jnp.sqrt(var + EPS) * g[None, :, None, None] + beta[None, :, None, None]
        return jnp.maximum(z, 0.0)

    a = conv_bn_relu(xp, w1, b1, g1, beta1)
    return conv_bn_relu(a, w2, b2, g2, beta2)


# --------------------------------------------------------------------------- main
if __name__ == "__main__":
    # Down_block(in_channels=4, out_channels=8): batch=2, spatial 16 -> 8 after pooling.
    N, Cin, Cout, H, W = 2, 4, 8, 16, 16

    ks = jax.random.split(jax.random.PRNGKey(0), 11)
    x = jax.random.normal(ks[0], (N, Cin, H, W), jnp.float32)

    w1 = 0.2 * jax.random.normal(ks[1], (Cout, Cin, 3, 3), jnp.float32)   # Conv1 weight
    b1 = 0.1 * jax.random.normal(ks[2], (Cout,), jnp.float32)             # Conv1 bias
    g1 = 1.0 + 0.1 * jax.random.normal(ks[3], (Cout,), jnp.float32)       # BN1 gamma
    be1 = 0.1 * jax.random.normal(ks[4], (Cout,), jnp.float32)            # BN1 beta
    w2 = 0.2 * jax.random.normal(ks[5], (Cout, Cout, 3, 3), jnp.float32)  # Conv2 weight
    b2 = 0.1 * jax.random.normal(ks[6], (Cout,), jnp.float32)             # Conv2 bias
    g2 = 1.0 + 0.1 * jax.random.normal(ks[7], (Cout,), jnp.float32)       # BN2 gamma
    be2 = 0.1 * jax.random.normal(ks[8], (Cout,), jnp.float32)            # BN2 beta
    params = (w1, b1, g1, be1, w2, b2, g2, be2)

    fwd = jax.jit(down_block_forward)
    out = jax.block_until_ready(fwd(x, params))
    assert out.shape == (N, Cout, H // 2, W // 2)

    # bf16 GEMM operands (f32 accumulation / f32 BN math) -> loosened tolerance vs f32 ref.
    ref = reference_forward(x, params)
    np.testing.assert_allclose(np.asarray(out), np.asarray(ref), rtol=5e-2, atol=5e-2)

    # TODO(synk): BatchNorm running_mean/running_var side-effect updates are not modeled
    # (only the training-mode forward output, which does not depend on them).
    print("KERNEL_OK")
</pallas_src>

<mosaic_0001>
module attributes {stable_mosaic.version = 11 : i64} {
  func.func @conv_kernel_full(%arg0: i32, %arg1: memref<1x10x10x4xbf16, #tpu.memory_space<vmem>>, %arg2: memref<36x128xbf16, #tpu.memory_space<vmem>>, %arg3: memref<1x128xf32, #tpu.memory_space<vmem>>, %arg4: memref<1x8x8x128xbf16, #tpu.memory_space<vmem>>, %arg5: memref<1x1x2x128xf32, #tpu.memory_space<vmem>>) attributes {dimension_semantics = [#tpu.dimension_semantics<parallel>], iteration_bounds = array<i64: 2>, scalar_prefetch = 0 : i64, scratch_operands = 0 : i64, tpu.core_type = #tpu.core_type<tc>, window_params = [{transform_indices = @transform_0, window_bounds = array<i64: 1, 10, 10, 4>}, {pipeline_mode = #tpu.pipeline_mode<synchronous>, transform_indices = @transform_1, window_bounds = array<i64: 36, 128>}, {pipeline_mode = #tpu.pipeline_mode<synchronous>, transform_indices = @transform_2, window_bounds = array<i64: 1, 128>}, {transform_indices = @transform_3, window_bounds = array<i64: 1, 8, 8, 128>}, {transform_indices = @transform_4, window_bounds = array<i64: 1, 1, 2, 128>}]} {
    %c0 = arith.constant 0 : index
    %c0_0 = arith.constant 0 : index
    %c0_1 = arith.constant 0 : index
    %c0_2 = arith.constant 0 : index
    %0 = vector.load %arg1[%c0, %c0_0, %c0_1, %c0_2] : memref<1x10x10x4xbf16, #tpu.memory_space<vmem>>, vector<1x10x10x4xbf16>
    %1 = vector.shape_cast %0 : vector<1x10x10x4xbf16> to vector<10x10x4xbf16>
    %cst = arith.constant 0.000000e+00 : f32
    %2 = vector.broadcast %cst : f32 to vector<64x128xf32>
    %3 = vector.extract_strided_slice %1 {offsets = [0, 0, 0], sizes = [8, 8, 4], strides = [1, 1, 1]} : vector<10x10x4xbf16> to vector<8x8x4xbf16>
    %4 = vector.shape_cast %3 : vector<8x8x4xbf16> to vector<64x4xbf16>
    %c0_3 = arith.constant 0 : index
    %c0_4 = arith.constant 0 : index
    %5 = vector.load %arg2[%c0_3, %c0_4] : memref<36x128xbf16, #tpu.memory_space<vmem>>, vector<4x128xbf16>
    %cst_5 = arith.constant dense<0.000000e+00> : vector<64x128xf32>
    %6 = tpu.matmul %4, %5, %cst_5 {dimension_numbers = #tpu.dot_dimension_numbers<[1], [0], [0], [1], [0, 0, 1, 1], [], []>} : vector<64x4xbf16>, vector<4x128xbf16>, vector<64x128xf32> -> vector<64x128xf32>
    %7 = arith.addf %2, %6 : vector<64x128xf32>
    %8 = vector.extract_strided_slice %1 {offsets = [0, 1, 0], sizes = [8, 8, 4], strides = [1, 1, 1]} : vector<10x10x4xbf16> to vector<8x8x4xbf16>
    %9 = vector.shape_cast %8 : vector<8x8x4xbf16> to vector<64x4xbf16>
    %c4 = arith.constant 4 : index
    %c0_6 = arith.constant 0 : index
    %10 = vector.load %arg2[%c4, %c0_6] : memref<36x128xbf16, #tpu.memory_space<vmem>>, vector<4x128xbf16>
    %cst_7 = arith.constant dense<0.000000e+00> : vector<64x128xf32>
    %11 = tpu.matmul %9, %10, %cst_7 {dimension_numbers = #tpu.dot_dimension_numbers<[1], [0], [0], [1], [0, 0, 1, 1], [], []>} : vector<64x4xbf16>, vector<4x128xbf16>, vector<64x128xf32> -> vector<64x128xf32>
    %12 = arith.addf %7, %11 : vector<64x128xf32>
    %13 = vector.extract_strided_slice %1 {offsets = [0, 2, 0], sizes = [8, 8, 4], strides = [1, 1, 1]} : vector<10x10x4xbf16> to vector<8x8x4xbf16>
    %14 = vector.shape_cast %13 : vector<8x8x4xbf16> to vector<64x4xbf16>
    %c8 = arith.constant 8 : index
    %c0_8 = arith.constant 0 : index
    %15 = vector.load %arg2[%c8, %c0_8] : memref<36x128xbf16, #tpu.memory_space<vmem>>, vector<4x128xbf16>
    %cst_9 = arith.constant dense<0.000000e+00> : vector<64x128xf32>
    %16 = tpu.matmul %14, %15, %cst_9 {dimension_numbers = #tpu.dot_dimension_numbers<[1], [0], [0], [1], [0, 0, 1, 1], [], []>} : vector<64x4xbf16>, vector<4x128xbf16>, vector<64x128xf32> -> vector<64x128xf32>
    %17 = arith.addf %12, %16 : vector<64x128xf32>
    %18 = vector.extract_strided_slice %1 {offsets = [1, 0, 0], sizes = [8, 8, 4], strides = [1, 1, 1]} : vector<10x10x4xbf16> to vector<8x8x4xbf16>
    %19 = vector.shape_cast %18 : vector<8x8x4xbf16> to vector<64x4xbf16>
    %c12 = arith.constant 12 : index
    %c0_10 = arith.constant 0 : index
    %20 = vector.load %arg2[%c12, %c0_10] : memref<36x128xbf16, #tpu.memory_space<vmem>>, vector<4x128xbf16>
    %cst_11 = arith.constant dense<0.000000e+00> : vector<64x128xf32>
    %21 = tpu.matmul %19, %20, %cst_11 {dimension_numbers = #tpu.dot_dimension_numbers<[1], [0], [0], [1], [0, 0, 1, 1], [], []>} : vector<64x4xbf16>, vector<4x128xbf16>, vector<64x128xf32> -> vector<64x128xf32>
    %22 = arith.addf %17, %21 : vector<64x128xf32>
    %23 = vector.extract_strided_slice %1 {offsets = [1, 1, 0], sizes = [8, 8, 4], strides = [1, 1, 1]} : vector<10x10x4xbf16> to vector<8x8x4xbf16>
    %24 = vector.shape_cast %23 : vector<8x8x4xbf16> to vector<64x4xbf16>
    %c16 = arith.constant 16 : index
    %c0_12 = arith.constant 0 : index
    %25 = vector.load %arg2[%c16, %c0_12] : memref<36x128xbf16, #tpu.memory_space<vmem>>, vector<4x128xbf16>
    %cst_13 = arith.constant dense<0.000000e+00> : vector<64x128xf32>
    %26 = tpu.matmul %24, %25, %cst_13 {dimension_numbers = #tpu.dot_dimension_numbers<[1], [0], [0], [1], [0, 0, 1, 1], [], []>} : vector<64x4xbf16>, vector<4x128xbf16>, vector<64x128xf32> -> vector<64x128xf32>
    %27 = arith.addf %22, %26 : vector<64x128xf32>
    %28 = vector.extract_strided_slice %1 {offsets = [1, 2, 0], sizes = [8, 8, 4], strides = [1, 1, 1]} : vector<10x10x4xbf16> to vector<8x8x4xbf16>
    %29 = vector.shape_cast %28 : vector<8x8x4xbf16> to vector<64x4xbf16>
    %c20 = arith.constant 20 : index
    %c0_14 = arith.constant 0 : index
    %30 = vector.load %arg2[%c20, %c0_14] : memref<36x128xbf16, #tpu.memory_space<vmem>>, vector<4x128xbf16>
    %cst_15 = arith.constant dense<0.000000e+00> : vector<64x128xf32>
    %31 = tpu.matmul %29, %30, %cst_15 {dimension_numbers = #tpu.dot_dimension_numbers<[1], [0], [0], [1], [0, 0, 1, 1], [], []>} : vector<64x4xbf16>, vector<4x128xbf16>, vector<64x128xf32> -> vector<64x128xf32>
    %32 = arith.addf %27, %31 : vector<64x128xf32>
    %33 = vector.extract_strided_slice %1 {offsets = [2, 0, 0], sizes = [8, 8, 4], strides = [1, 1, 1]} : vector<10x10x4xbf16> to vector<8x8x4xbf16>
    %34 = vector.shape_cast %33 : vector<8x8x4xbf16> to vector<64x4xbf16>
    %c24 = arith.constant 24 : index
    %c0_16 = arith.constant 0 : index
    %35 = vector.load %arg2[%c24, %c0_16] : memref<36x128xbf16, #tpu.memory_space<vmem>>, vector<4x128xbf16>
    %cst_17 = arith.constant dense<0.000000e+00> : vector<64x128xf32>
    %36 = tpu.matmul %34, %35, %cst_17 {dimension_numbers = #tpu.dot_dimension_numbers<[1], [0], [0], [1], [0, 0, 1, 1], [], []>} : vector<64x4xbf16>, vector<4x128xbf16>, vector<64x128xf32> -> vector<64x128xf32>
    %37 = arith.addf %32, %36 : vector<64x128xf32>
    %38 = vector.extract_strided_slice %1 {offsets = [2, 1, 0], sizes = [8, 8, 4], strides = [1, 1, 1]} : vector<10x10x4xbf16> to vector<8x8x4xbf16>
    %39 = vector.shape_cast %38 : vector<8x8x4xbf16> to vector<64x4xbf16>
    %c28 = arith.constant 28 : index
    %c0_18 = arith.constant 0 : index
    %40 = vector.load %arg2[%c28, %c0_18] : memref<36x128xbf16, #tpu.memory_space<vmem>>, vector<4x128xbf16>
    %cst_19 = arith.constant dense<0.000000e+00> : vector<64x128xf32>
    %41 = tpu.matmul %39, %40, %cst_19 {dimension_numbers = #tpu.dot_dimension_numbers<[1], [0], [0], [1], [0, 0, 1, 1], [], []>} : vector<64x4xbf16>, vector<4x128xbf16>, vector<64x128xf32> -> vector<64x128xf32>
    %42 = arith.addf %37, %41 : vector<64x128xf32>
    %43 = vector.extract_strided_slice %1 {offsets = [2, 2, 0], sizes = [8, 8, 4], strides = [1, 1, 1]} : vector<10x10x4xbf16> to vector<8x8x4xbf16>
    %44 = vector.shape_cast %43 : vector<8x8x4xbf16> to vector<64x4xbf16>
    %c32 = arith.constant 32 : index
    %c0_20 = arith.constant 0 : index
    %45 = vector.load %arg2[%c32, %c0_20] : memref<36x128xbf16, #tpu.memory_space<vmem>>, vector<4x128xbf16>
    %cst_21 = arith.constant dense<0.000000e+00> : vector<64x128xf32>
    %46 = tpu.matmul %44, %45, %cst_21 {dimension_numbers = #tpu.dot_dimension_numbers<[1], [0], [0], [1], [0, 0, 1, 1], [], []>} : vector<64x4xbf16>, vector<4x128xbf16>, vector<64x128xf32> -> vector<64x128xf32>
    %47 = arith.addf %42, %46 : vector<64x128xf32>
    %c0_22 = arith.constant 0 : index
    %c0_23 = arith.constant 0 : index
    %48 = vector.load %arg3[%c0_22, %c0_23] : memref<1x128xf32, #tpu.memory_space<vmem>>, vector<1x128xf32>
    %49 = vector.broadcast %48 : vector<1x128xf32> to vector<64x128xf32>
    %50 = arith.addf %47, %49 : vector<64x128xf32>
    %51 = vector.shape_cast %50 : vector<64x128xf32> to vector<1x8x8x128xf32>
    %52 = arith.truncf %51 : vector<1x8x8x128xf32> to vector<1x8x8x128xbf16>
    %c0_24 = arith.constant 0 : index
    %c0_25 = arith.constant 0 : index
    %c0_26 = arith.constant 0 : index
    %c0_27 = arith.constant 0 : index
    %53 = vector.load %arg4[%c0_24, %c0_25, %c0_26, %c0_27] : memref<1x8x8x128xbf16, #tpu.memory_space<vmem>>, vector<1x8x8x128xbf16>
    tpu.vector_store %arg4[%c0_24, %c0_25, %c0_26, %c0_27], %52 {strides = array<i32>} : memref<1x8x8x128xbf16, #tpu.memory_space<vmem>>, vector<1x8x8x128xbf16>,
    %cst_28 = arith.constant dense<0.000000e+00> : vector<128xf32>
    %54 = vector.multi_reduction <add>, %50, %cst_28 [0] : vector<64x128xf32> to vector<128xf32>
    %55 = vector.shape_cast %54 : vector<128xf32> to vector<1x128xf32>
    %56 = arith.mulf %50, %50 : vector<64x128xf32>
    %cst_29 = arith.constant dense<0.000000e+00> : vector<128xf32>
    %57 = vector.multi_reduction <add>, %56, %cst_29 [0] : vector<64x128xf32> to vector<128xf32>
    %58 = vector.shape_cast %57 : vector<128xf32> to vector<1x128xf32>
    %59 = tpu.concatenate %55, %58 in 0 : vector<1x128xf32>, vector<1x128xf32> -> vector<2x128xf32>
    %60 = vector.shape_cast %59 : vector<2x128xf32> to vector<1x1x2x128xf32>
    %c0_30 = arith.constant 0 : index
    %c0_31 = arith.constant 0 : index
    %c0_32 = arith.constant 0 : index
    %c0_33 = arith.constant 0 : index
    %61 = vector.load %arg5[%c0_30, %c0_31, %c0_32, %c0_33] : memref<1x1x2x128xf32, #tpu.memory_space<vmem>>, vector<1x1x2x128xf32>
    tpu.vector_store %arg5[%c0_30, %c0_31, %c0_32, %c0_33], %60 {strides = array<i32>} : memref<1x1x2x128xf32, #tpu.memory_space<vmem>>, vector<1x1x2x128xf32>,
    return
  }
  func.func @transform_0(%arg0: i32) -> (i32, i32, i32, i32) {
    %c0_i32 = arith.constant 0 : i32
    %c0_i32_0 = arith.constant 0 : i32
    %c0_i32_1 = arith.constant 0 : i32
    %c0_i32_2 = arith.constant 0 : i32
    return %arg0, %c0_i32, %c0_i32_0, %c0_i32_1 : i32, i32, i32, i32
  }
  func.func @transform_1(%arg0: i32) -> (i32, i32) {
    %c0_i32 = arith.constant 0 : i32
    %c0_i32_0 = arith.constant 0 : i32
    %c0_i32_1 = arith.constant 0 : i32
    return %c0_i32, %c0_i32_0 : i32, i32
  }
  func.func @transform_2(%arg0: i32) -> (i32, i32) {
    %c0_i32 = arith.constant 0 : i32
    %c0_i32_0 = arith.constant 0 : i32
    %c0_i32_1 = arith.constant 0 : i32
    return %c0_i32, %c0_i32_0 : i32, i32
  }
  func.func @transform_3(%arg0: i32) -> (i32, i32, i32, i32) {
    %c0_i32 = arith.constant 0 : i32
    %c0_i32_0 = arith.constant 0 : i32
    %c0_i32_1 = arith.constant 0 : i32
    %c0_i32_2 = arith.constant 0 : i32
    return %arg0, %c0_i32, %c0_i32_0, %c0_i32_1 : i32, i32, i32, i32
  }
  func.func @transform_4(%arg0: i32) -> (i32, i32, i32, i32) {
    %c0_i32 = arith.constant 0 : i32
    %c0_i32_0 = arith.constant 0 : i32
    %c0_i32_1 = arith.constant 0 : i32
    %c0_i32_2 = arith.constant 0 : i32
    return %arg0, %c0_i32, %c0_i32_0, %c0_i32_1 : i32, i32, i32, i32
  }
}

module attributes {stable_mosaic.version = 11 : i64} {
  func.func @bn_relu_pad_kernel(%arg0: i32, %arg1: memref<1x8x8x128xbf16, #tpu.memory_space<vmem>>, %arg2: memref<1x128xf32, #tpu.memory_space<vmem>>, %arg3: memref<1x128xf32, #tpu.memory_space<vmem>>, %arg4: memref<1x10x10x128xbf16, #tpu.memory_space<vmem>>) attributes {dimension_semantics = [#tpu.dimension_semantics<parallel>], iteration_bounds = array<i64: 2>, scalar_prefetch = 0 : i64, scratch_operands = 0 : i64, tpu.core_type = #tpu.core_type<tc>, window_params = [{transform_indices = @transform_0, window_bounds = array<i64: 1, 8, 8, 128>}, {pipeline_mode = #tpu.pipeline_mode<synchronous>, transform_indices = @transform_1, window_bounds = array<i64: 1, 128>}, {pipeline_mode = #tpu.pipeline_mode<synchronous>, transform_indices = @transform_2, window_bounds = array<i64: 1, 128>}, {transform_indices = @transform_3, window_bounds = array<i64: 1, 10, 10, 128>}]} {
    %c0 = arith.constant 0 : index
    %c0_0 = arith.constant 0 : index
    %c0_1 = arith.constant 0 : index
    %c0_2 = arith.constant 0 : index
    %0 = vector.load %arg1[%c0, %c0_0, %c0_1, %c0_2] : memref<1x8x8x128xbf16, #tpu.memory_space<vmem>>, vector<1x8x8x128xbf16>
    %1 = vector.shape_cast %0 : vector<1x8x8x128xbf16> to vector<8x8x128xbf16>
    %2 = arith.extf %1 : vector<8x8x128xbf16> to vector<8x8x128xf32>
    %c0_3 = arith.constant 0 : index
    %c0_4 = arith.constant 0 : index
    %3 = vector.load %arg2[%c0_3, %c0_4] : memref<1x128xf32, #tpu.memory_space<vmem>>, vector<1x128xf32>
    %4 = vector.shape_cast %3 : vector<1x128xf32> to vector<1x1x128xf32>
    %c0_5 = arith.constant 0 : index
    %c0_6 = arith.constant 0 : index
    %5 = vector.load %arg3[%c0_5, %c0_6] : memref<1x128xf32, #tpu.memory_space<vmem>>, vector<1x128xf32>
    %6 = vector.shape_cast %5 : vector<1x128xf32> to vector<1x1x128xf32>
    %7 = vector.broadcast %4 : vector<1x1x128xf32> to vector<8x8x128xf32>
    %8 = arith.mulf %2, %7 : vector<8x8x128xf32>
    %9 = vector.broadcast %6 : vector<1x1x128xf32> to vector<8x8x128xf32>
    %10 = arith.addf %8, %9 : vector<8x8x128xf32>
    %cst = arith.constant 0.000000e+00 : f32
    %11 = vector.broadcast %cst : f32 to vector<8x8x128xf32>
    %12 = arith.maximumf %10, %11 : vector<8x8x128xf32>
    %13 = arith.truncf %12 : vector<8x8x128xf32> to vector<8x8x128xbf16>
    %cst_7 = arith.constant 0.000000e+00 : bf16
    %14 = vector.broadcast %cst_7 : bf16 to vector<8x1x128xbf16>
    %cst_8 = arith.constant 0.000000e+00 : bf16
    %15 = vector.broadcast %cst_8 : bf16 to vector<1x10x128xbf16>
    %16 = tpu.concatenate %14, %13, %14 in 1 : vector<8x1x128xbf16>, vector<8x8x128xbf16>, vector<8x1x128xbf16> -> vector<8x10x128xbf16>
    %17 = tpu.concatenate %15, %16, %15 in 0 : vector<1x10x128xbf16>, vector<8x10x128xbf16>, vector<1x10x128xbf16> -> vector<10x10x128xbf16>
    %18 = vector.shape_cast %17 : vector<10x10x128xbf16> to vector<1x10x10x128xbf16>
    %c0_9 = arith.constant 0 : index
    %c0_10 = arith.constant 0 : index
    %c0_11 = arith.constant 0 : index
    %c0_12 = arith.constant 0 : index
    %19 = vector.load %arg4[%c0_9, %c0_10, %c0_11, %c0_12] : memref<1x10x10x128xbf16, #tpu.memory_space<vmem>>, vector<1x10x10x128xbf16>
    tpu.vector_store %arg4[%c0_9, %c0_10, %c0_11, %c0_12], %18 {strides = array<i32>} : memref<1x10x10x128xbf16, #tpu.memory_space<vmem>>, vector<1x10x10x128xbf16>,
    return
  }
  func.func @transform_0(%arg0: i32) -> (i32, i32, i32, i32) {
    %c0_i32 = arith.constant 0 : i32
    %c0_i32_0 = arith.constant 0 : i32
    %c0_i32_1 = arith.constant 0 : i32
    %c0_i32_2 = arith.constant 0 : i32
    return %arg0, %c0_i32, %c0_i32_0, %c0_i32_1 : i32, i32, i32, i32
  }
  func.func @transform_1(%arg0: i32) -> (i32, i32) {
    %c0_i32 = arith.constant 0 : i32
    %c0_i32_0 = arith.constant 0 : i32
    %c0_i32_1 = arith.constant 0 : i32
    return %c0_i32, %c0_i32_0 : i32, i32
  }
  func.func @transform_2(%arg0: i32) -> (i32, i32) {
    %c0_i32 = arith.constant 0 : i32
    %c0_i32_0 = arith.constant 0 : i32
    %c0_i32_1 = arith.constant 0 : i32
    return %c0_i32, %c0_i32_0 : i32, i32
  }
  func.func @transform_3(%arg0: i32) -> (i32, i32, i32, i32) {
    %c0_i32 = arith.constant 0 : i32
    %c0_i32_0 = arith.constant 0 : i32
    %c0_i32_1 = arith.constant 0 : i32
    %c0_i32_2 = arith.constant 0 : i32
    return %arg0, %c0_i32, %c0_i32_0, %c0_i32_1 : i32, i32, i32, i32
  }
}

module attributes {stable_mosaic.version = 11 : i64} {
  func.func @conv_kernel_full(%arg0: i32, %arg1: memref<1x10x10x128xbf16, #tpu.memory_space<vmem>>, %arg2: memref<1152x128xbf16, #tpu.memory_space<vmem>>, %arg3: memref<1x128xf32, #tpu.memory_space<vmem>>, %arg4: memref<1x8x8x128xbf16, #tpu.memory_space<vmem>>, %arg5: memref<1x1x2x128xf32, #tpu.memory_space<vmem>>) attributes {dimension_semantics = [#tpu.dimension_semantics<parallel>], iteration_bounds = array<i64: 2>, scalar_prefetch = 0 : i64, scratch_operands = 0 : i64, tpu.core_type = #tpu.core_type<tc>, window_params = [{transform_indices = @transform_0, window_bounds = array<i64: 1, 10, 10, 128>}, {pipeline_mode = #tpu.pipeline_mode<synchronous>, transform_indices = @transform_1, window_bounds = array<i64: 1152, 128>}, {pipeline_mode = #tpu.pipeline_mode<synchronous>, transform_indices = @transform_2, window_bounds = array<i64: 1, 128>}, {transform_indices = @transform_3, window_bounds = array<i64: 1, 8, 8, 128>}, {transform_indices = @transform_4, window_bounds = array<i64: 1, 1, 2, 128>}]} {
    %c0 = arith.constant 0 : index
    %c0_0 = arith.constant 0 : index
    %c0_1 = arith.constant 0 : index
    %c0_2 = arith.constant 0 : index
    %0 = vector.load %arg1[%c0, %c0_0, %c0_1, %c0_2] : memref<1x10x10x128xbf16, #tpu.memory_space<vmem>>, vector<1x10x10x128xbf16>
    %1 = vector.shape_cast %0 : vector<1x10x10x128xbf16> to vector<10x10x128xbf16>
    %cst = arith.constant 0.000000e+00 : f32
    %2 = vector.broadcast %cst : f32 to vector<64x128xf32>
    %3 = vector.extract_strided_slice %1 {offsets = [0, 0, 0], sizes = [8, 8, 128], strides = [1, 1, 1]} : vector<10x10x128xbf16> to vector<8x8x128xbf16>
    %4 = vector.shape_cast %3 : vector<8x8x128xbf16> to vector<64x128xbf16>
    %c0_3 = arith.constant 0 : index
    %c0_4 = arith.constant 0 : index
    %5 = vector.load %arg2[%c0_3, %c0_4] : memref<1152x128xbf16, #tpu.memory_space<vmem>>, vector<128x128xbf16>
    %cst_5 = arith.constant dense<0.000000e+00> : vector<64x128xf32>
    %6 = tpu.matmul %4, %5, %cst_5 {dimension_numbers = #tpu.dot_dimension_numbers<[1], [0], [0], [1], [0, 0, 1, 1], [], []>} : vector<64x128xbf16>, vector<128x128xbf16>, vector<64x128xf32> -> vector<64x128xf32>
    %7 = arith.addf %2, %6 : vector<64x128xf32>
    %8 = vector.extract_strided_slice %1 {offsets = [0, 1, 0], sizes = [8, 8, 128], strides = [1, 1, 1]} : vector<10x10x128xbf16> to vector<8x8x128xbf16>
    %9 = vector.shape_cast %8 : vector<8x8x128xbf16> to vector<64x128xbf16>
    %c128 = arith.constant 128 : index
    %c0_6 = arith.constant 0 : index
    %10 = vector.load %arg2[%c128, %c0_6] : memref<1152x128xbf16, #tpu.memory_space<vmem>>, vector<128x128xbf16>
    %cst_7 = arith.constant dense<0.000000e+00> : vector<64x128xf32>
    %11 = tpu.matmul %9, %10, %cst_7 {dimension_numbers = #tpu.dot_dimension_numbers<[1], [0], [0], [1], [0, 0, 1, 1], [], []>} : vector<64x128xbf16>, vector<128x128xbf16>, vector<64x128xf32> -> vector<64x128xf32>
    %12 = arith.addf %7, %11 : vector<64x128xf32>
    %13 = vector.extract_strided_slice %1 {offsets = [0, 2, 0], sizes = [8, 8, 128], strides = [1, 1, 1]} : vector<10x10x128xbf16> to vector<8x8x128xbf16>
    %14 = vector.shape_cast %13 : vector<8x8x128xbf16> to vector<64x128xbf16>
    %c256 = arith.constant 256 : index
    %c0_8 = arith.constant 0 : index
    %15 = vector.load %arg2[%c256, %c0_8] : memref<1152x128xbf16, #tpu.memory_space<vmem>>, vector<128x128xbf16>
    %cst_9 = arith.constant dense<0.000000e+00> : vector<64x128xf32>
    %16 = tpu.matmul %14, %15, %cst_9 {dimension_numbers = #tpu.dot_dimension_numbers<[1], [0], [0], [1], [0, 0, 1, 1], [], []>} : vector<64x128xbf16>, vector<128x128xbf16>, vector<64x128xf32> -> vector<64x128xf32>
    %17 = arith.addf %12, %16 : vector<64x128xf32>
    %18 = vector.extract_strided_slice %1 {offsets = [1, 0, 0], sizes = [8, 8, 128], strides = [1, 1, 1]} : vector<10x10x128xbf16> to vector<8x8x128xbf16>
    %19 = vector.shape_cast %18 : vector<8x8x128xbf16> to vector<64x128xbf16>
    %c384 = arith.constant 384 : index
    %c0_10 = arith.constant 0 : index
    %20 = vector.load %arg2[%c384, %c0_10] : memref<1152x128xbf16, #tpu.memory_space<vmem>>, vector<128x128xbf16>
    %cst_11 = arith.constant dense<0.000000e+00> : vector<64x128xf32>
    %21 = tpu.matmul %19, %20, %cst_11 {dimension_numbers = #tpu.dot_dimension_numbers<[1], [0], [0], [1], [0, 0, 1, 1], [], []>} : vector<64x128xbf16>, vector<128x128xbf16>, vector<64x128xf32> -> vector<64x128xf32>
    %22 = arith.addf %17, %21 : vector<64x128xf32>
    %23 = vector.extract_strided_slice %1 {offsets = [1, 1, 0], sizes = [8, 8, 128], strides = [1, 1, 1]} : vector<10x10x128xbf16> to vector<8x8x128xbf16>
    %24 = vector.shape_cast %23 : vector<8x8x128xbf16> to vector<64x128xbf16>
    %c512 = arith.constant 512 : index
    %c0_12 = arith.constant 0 : index
    %25 = vector.load %arg2[%c512, %c0_12] : memref<1152x128xbf16, #tpu.memory_space<vmem>>, vector<128x128xbf16>
    %cst_13 = arith.constant dense<0.000000e+00> : vector<64x128xf32>
    %26 = tpu.matmul %24, %25, %cst_13 {dimension_numbers = #tpu.dot_dimension_numbers<[1], [0], [0], [1], [0, 0, 1, 1], [], []>} : vector<64x128xbf16>, vector<128x128xbf16>, vector<64x128xf32> -> vector<64x128xf32>
    %27 = arith.addf %22, %26 : vector<64x128xf32>
    %28 = vector.extract_strided_slice %1 {offsets = [1, 2, 0], sizes = [8, 8, 128], strides = [1, 1, 1]} : vector<10x10x128xbf16> to vector<8x8x128xbf16>
    %29 = vector.shape_cast %28 : vector<8x8x128xbf16> to vector<64x128xbf16>
    %c640 = arith.constant 640 : index
    %c0_14 = arith.constant 0 : index
    %30 = vector.load %arg2[%c640, %c0_14] : memref<1152x128xbf16, #tpu.memory_space<vmem>>, vector<128x128xbf16>
    %cst_15 = arith.constant dense<0.000000e+00> : vector<64x128xf32>
    %31 = tpu.matmul %29, %30, %cst_15 {dimension_numbers = #tpu.dot_dimension_numbers<[1], [0], [0], [1], [0, 0, 1, 1], [], []>} : vector<64x128xbf16>, vector<128x128xbf16>, vector<64x128xf32> -> vector<64x128xf32>
    %32 = arith.addf %27, %31 : vector<64x128xf32>
    %33 = vector.extract_strided_slice %1 {offsets = [2, 0, 0], sizes = [8, 8, 128], strides = [1, 1, 1]} : vector<10x10x128xbf16> to vector<8x8x128xbf16>
    %34 = vector.shape_cast %33 : vector<8x8x128xbf16> to vector<64x128xbf16>
    %c768 = arith.constant 768 : index
    %c0_16 = arith.constant 0 : index
    %35 = vector.load %arg2[%c768, %c0_16] : memref<1152x128xbf16, #tpu.memory_space<vmem>>, vector<128x128xbf16>
    %cst_17 = arith.constant dense<0.000000e+00> : vector<64x128xf32>
    %36 = tpu.matmul %34, %35, %cst_17 {dimension_numbers = #tpu.dot_dimension_numbers<[1], [0], [0], [1], [0, 0, 1, 1], [], []>} : vector<64x128xbf16>, vector<128x128xbf16>, vector<64x128xf32> -> vector<64x128xf32>
    %37 = arith.addf %32, %36 : vector<64x128xf32>
    %38 = vector.extract_strided_slice %1 {offsets = [2, 1, 0], sizes = [8, 8, 128], strides = [1, 1, 1]} : vector<10x10x128xbf16> to vector<8x8x128xbf16>
    %39 = vector.shape_cast %38 : vector<8x8x128xbf16> to vector<64x128xbf16>
    %c896 = arith.constant 896 : index
    %c0_18 = arith.constant 0 : index
    %40 = vector.load %arg2[%c896, %c0_18] : memref<1152x128xbf16, #tpu.memory_space<vmem>>, vector<128x128xbf16>
    %cst_19 = arith.constant dense<0.000000e+00> : vector<64x128xf32>
    %41 = tpu.matmul %39, %40, %cst_19 {dimension_numbers = #tpu.dot_dimension_numbers<[1], [0], [0], [1], [0, 0, 1, 1], [], []>} : vector<64x128xbf16>, vector<128x128xbf16>, vector<64x128xf32> -> vector<64x128xf32>
    %42 = arith.addf %37, %41 : vector<64x128xf32>
    %43 = vector.extract_strided_slice %1 {offsets = [2, 2, 0], sizes = [8, 8, 128], strides = [1, 1, 1]} : vector<10x10x128xbf16> to vector<8x8x128xbf16>
    %44 = vector.shape_cast %43 : vector<8x8x128xbf16> to vector<64x128xbf16>
    %c1024 = arith.constant 1024 : index
    %c0_20 = arith.constant 0 : index
    %45 = vector.load %arg2[%c1024, %c0_20] : memref<1152x128xbf16, #tpu.memory_space<vmem>>, vector<128x128xbf16>
    %cst_21 = arith.constant dense<0.000000e+00> : vector<64x128xf32>
    %46 = tpu.matmul %44, %45, %cst_21 {dimension_numbers = #tpu.dot_dimension_numbers<[1], [0], [0], [1], [0, 0, 1, 1], [], []>} : vector<64x128xbf16>, vector<128x128xbf16>, vector<64x128xf32> -> vector<64x128xf32>
    %47 = arith.addf %42, %46 : vector<64x128xf32>
    %c0_22 = arith.constant 0 : index
    %c0_23 = arith.constant 0 : index
    %48 = vector.load %arg3[%c0_22, %c0_23] : memref<1x128xf32, #tpu.memory_space<vmem>>, vector<1x128xf32>
    %49 = vector.broadcast %48 : vector<1x128xf32> to vector<64x128xf32>
    %50 = arith.addf %47, %49 : vector<64x128xf32>
    %51 = vector.shape_cast %50 : vector<64x128xf32> to vector<1x8x8x128xf32>
    %52 = arith.truncf %51 : vector<1x8x8x128xf32> to vector<1x8x8x128xbf16>
    %c0_24 = arith.constant 0 : index
    %c0_25 = arith.constant 0 : index
    %c0_26 = arith.constant 0 : index
    %c0_27 = arith.constant 0 : index
    %53 = vector.load %arg4[%c0_24, %c0_25, %c0_26, %c0_27] : memref<1x8x8x128xbf16, #tpu.memory_space<vmem>>, vector<1x8x8x128xbf16>
    tpu.vector_store %arg4[%c0_24, %c0_25, %c0_26, %c0_27], %52 {strides = array<i32>} : memref<1x8x8x128xbf16, #tpu.memory_space<vmem>>, vector<1x8x8x128xbf16>,
    %cst_28 = arith.constant dense<0.000000e+00> : vector<128xf32>
    %54 = vector.multi_reduction <add>, %50, %cst_28 [0] : vector<64x128xf32> to vector<128xf32>
    %55 = vector.shape_cast %54 : vector<128xf32> to vector<1x128xf32>
    %56 = arith.mulf %50, %50 : vector<64x128xf32>
    %cst_29 = arith.constant dense<0.000000e+00> : vector<128xf32>
    %57 = vector.multi_reduction <add>, %56, %cst_29 [0] : vector<64x128xf32> to vector<128xf32>
    %58 = vector.shape_cast %57 : vector<128xf32> to vector<1x128xf32>
    %59 = tpu.concatenate %55, %58 in 0 : vector<1x128xf32>, vector<1x128xf32> -> vector<2x128xf32>
    %60 = vector.shape_cast %59 : vector<2x128xf32> to vector<1x1x2x128xf32>
    %c0_30 = arith.constant 0 : index
    %c0_31 = arith.constant 0 : index
    %c0_32 = arith.constant 0 : index
    %c0_33 = arith.constant 0 : index
    %61 = vector.load %arg5[%c0_30, %c0_31, %c0_32, %c0_33] : memref<1x1x2x128xf32, #tpu.memory_space<vmem>>, vector<1x1x2x128xf32>
    tpu.vector_store %arg5[%c0_30, %c0_31, %c0_32, %c0_33], %60 {strides = array<i32>} : memref<1x1x2x128xf32, #tpu.memory_space<vmem>>, vector<1x1x2x128xf32>,
    return
  }
  func.func @transform_0(%arg0: i32) -> (i32, i32, i32, i32) {
    %c0_i32 = arith.constant 0 : i32
    %c0_i32_0 = arith.constant 0 : i32
    %c0_i32_1 = arith.constant 0 : i32
    %c0_i32_2 = arith.constant 0 : i32
    return %arg0, %c0_i32, %c0_i32_0, %c0_i32_1 : i32, i32, i32, i32
  }
  func.func @transform_1(%arg0: i32) -> (i32, i32) {
    %c0_i32 = arith.constant 0 : i32
    %c0_i32_0 = arith.constant 0 : i32
    %c0_i32_1 = arith.constant 0 : i32
    return %c0_i32, %c0_i32_0 : i32, i32
  }
  func.func @transform_2(%arg0: i32) -> (i32, i32) {
    %c0_i32 = arith.constant 0 : i32
    %c0_i32_0 = arith.constant 0 : i32
    %c0_i32_1 = arith.constant 0 : i32
    return %c0_i32, %c0_i32_0 : i32, i32
  }
  func.func @transform_3(%arg0: i32) -> (i32, i32, i32, i32) {
    %c0_i32 = arith.constant 0 : i32
    %c0_i32_0 = arith.constant 0 : i32
    %c0_i32_1 = arith.constant 0 : i32
    %c0_i32_2 = arith.constant 0 : i32
    return %arg0, %c0_i32, %c0_i32_0, %c0_i32_1 : i32, i32, i32, i32
  }
  func.func @transform_4(%arg0: i32) -> (i32, i32, i32, i32) {
    %c0_i32 = arith.constant 0 : i32
    %c0_i32_0 = arith.constant 0 : i32
    %c0_i32_1 = arith.constant 0 : i32
    %c0_i32_2 = arith.constant 0 : i32
    return %arg0, %c0_i32, %c0_i32_0, %c0_i32_1 : i32, i32, i32, i32
  }
}

module attributes {stable_mosaic.version = 11 : i64} {
  func.func @bn_relu_kernel(%arg0: i32, %arg1: memref<1x8x8x128xbf16, #tpu.memory_space<vmem>>, %arg2: memref<1x128xf32, #tpu.memory_space<vmem>>, %arg3: memref<1x128xf32, #tpu.memory_space<vmem>>, %arg4: memref<1x8x8x128xf32, #tpu.memory_space<vmem>>) attributes {dimension_semantics = [#tpu.dimension_semantics<parallel>], iteration_bounds = array<i64: 2>, scalar_prefetch = 0 : i64, scratch_operands = 0 : i64, tpu.core_type = #tpu.core_type<tc>, window_params = [{transform_indices = @transform_0, window_bounds = array<i64: 1, 8, 8, 128>}, {pipeline_mode = #tpu.pipeline_mode<synchronous>, transform_indices = @transform_1, window_bounds = array<i64: 1, 128>}, {pipeline_mode = #tpu.pipeline_mode<synchronous>, transform_indices = @transform_2, window_bounds = array<i64: 1, 128>}, {transform_indices = @transform_3, window_bounds = array<i64: 1, 8, 8, 128>}]} {
    %c0 = arith.constant 0 : index
    %c0_0 = arith.constant 0 : index
    %c0_1 = arith.constant 0 : index
    %c0_2 = arith.constant 0 : index
    %0 = vector.load %arg1[%c0, %c0_0, %c0_1, %c0_2] : memref<1x8x8x128xbf16, #tpu.memory_space<vmem>>, vector<1x8x8x128xbf16>
    %1 = arith.extf %0 : vector<1x8x8x128xbf16> to vector<1x8x8x128xf32>
    %c0_3 = arith.constant 0 : index
    %c0_4 = arith.constant 0 : index
    %2 = vector.load %arg2[%c0_3, %c0_4] : memref<1x128xf32, #tpu.memory_space<vmem>>, vector<1x128xf32>
    %3 = vector.shape_cast %2 : vector<1x128xf32> to vector<1x1x1x128xf32>
    %c0_5 = arith.constant 0 : index
    %c0_6 = arith.constant 0 : index
    %4 = vector.load %arg3[%c0_5, %c0_6] : memref<1x128xf32, #tpu.memory_space<vmem>>, vector<1x128xf32>
    %5 = vector.shape_cast %4 : vector<1x128xf32> to vector<1x1x1x128xf32>
    %6 = vector.broadcast %3 : vector<1x1x1x128xf32> to vector<1x8x8x128xf32>
    %7 = arith.mulf %1, %6 : vector<1x8x8x128xf32>
    %8 = vector.broadcast %5 : vector<1x1x1x128xf32> to vector<1x8x8x128xf32>
    %9 = arith.addf %7, %8 : vector<1x8x8x128xf32>
    %cst = arith.constant 0.000000e+00 : f32
    %10 = vector.broadcast %cst : f32 to vector<1x8x8x128xf32>
    %11 = arith.maximumf %9, %10 : vector<1x8x8x128xf32>
    %c0_7 = arith.constant 0 : index
    %c0_8 = arith.constant 0 : index
    %c0_9 = arith.constant 0 : index
    %c0_10 = arith.constant 0 : index
    %12 = vector.load %arg4[%c0_7, %c0_8, %c0_9, %c0_10] : memref<1x8x8x128xf32, #tpu.memory_space<vmem>>, vector<1x8x8x128xf32>
    tpu.vector_store %arg4[%c0_7, %c0_8, %c0_9, %c0_10], %11 {strides = array<i32>} : memref<1x8x8x128xf32, #tpu.memory_space<vmem>>, vector<1x8x8x128xf32>,
    return
  }
  func.func @transform_0(%arg0: i32) -> (i32, i32, i32, i32) {
    %c0_i32 = arith.constant 0 : i32
    %c0_i32_0 = arith.constant 0 : i32
    %c0_i32_1 = arith.constant 0 : i32
    %c0_i32_2 = arith.constant 0 : i32
    return %arg0, %c0_i32, %c0_i32_0, %c0_i32_1 : i32, i32, i32, i32
  }
  func.func @transform_1(%arg0: i32) -> (i32, i32) {
    %c0_i32 = arith.constant 0 : i32
    %c0_i32_0 = arith.constant 0 : i32
    %c0_i32_1 = arith.constant 0 : i32
    return %c0_i32, %c0_i32_0 : i32, i32
  }
  func.func @transform_2(%arg0: i32) -> (i32, i32) {
    %c0_i32 = arith.constant 0 : i32
    %c0_i32_0 = arith.constant 0 : i32
    %c0_i32_1 = arith.constant 0 : i32
    return %c0_i32, %c0_i32_0 : i32, i32
  }
  func.func @transform_3(%arg0: i32) -> (i32, i32, i32, i32) {
    %c0_i32 = arith.constant 0 : i32
    %c0_i32_0 = arith.constant 0 : i32
    %c0_i32_1 = arith.constant 0 : i32
    %c0_i32_2 = arith.constant 0 : i32
    return %arg0, %c0_i32, %c0_i32_0, %c0_i32_1 : i32, i32, i32, i32
  }
}

</mosaic_0001>

<bundles_post_ra>
// kernel: down_block_forward.5
= control target key start
LH: loop header
LB: loop body
LE: loop exit
PB: predicated region body
PF: predicated region fallthrough
CT: control target
= control target key end

     0   :  { %s547_s12 = smov 0   ;;  %s640_s0 = inlined_call_operand.vmem [shape: bf16[2,8,8,128], index: 0, kind: input, shape index: {}]   ;;  %s641_s1 = inlined_call_operand.vmem [shape: f32[1,128], index: 1, kind: input, shape index: {}]   ;;  %s642_s2 = inlined_call_operand.vmem [shape: f32[1,128], index: 2, kind: input, shape index: {}]   ;;  %s643_s3 = inlined_call_operand.vmem [shape: bf16[2,10,10,128], index: 3, kind: output, shape index: {}]  }
   0x1 LB: > { %s476_s13 = sadd.s32 4294967295, %s524_s12   ;;  %p480_p0 = scmp.ge.s32.totalorder %s524_s12, 1  ;;  %s524_s12 = sphi %s547_s12, %s13_s12  }
   0x2   : > { %p137_p1 = scmp.lt.s32.totalorder %s524_s12, 3 }
   0x4   : > { %p138_p2 = pnand %p480_p0, %p137_p1 }
   0x5   : > { %p161_p3 = scmp.lt.s32.totalorder (!%p138_p2), %s476_s13, 1 }
   0x6   : > { %141 = sbr.rel (%p138_p2) target bundleno = 58 (0x3a), region = 32 }
   0xb   : > { %v526_v0 = vmov 0   ;;  %s649_s13 = smov (!%p161_p3, %s476_s13), 1  ;;  %v516_v5 = vld [vmem:[%s641_s1] ss:$0 sm:$0xff]  ;;  %vm316_vm0 = vcmask 1040384   ;;  %vm327_vm2 = vcmask 1044480  }
   0xc   : > { %v347_v1 = vunpack.c.l.b16 %v526_v0  ;;  %v348_v2 = vunpack.c.h.b16 %v526_v0  ;;  %s506_s14 = smul.u32 80, %s649_s13  ;;  %s486_s15 = sshll.u32 %s649_s13, 5  ;;  %v517_v10 = vld [vmem:[%s642_s2] ss:$0 sm:$0xff]  ;;  %vm317_vm1 = vsmask.f32 256 }
   0xd   : > { %s165_s18 = scalar_lea.vmem %s640_s0, %s486_s15  ;;  %vm328_vm3 = vsmask.f32 4352  ;;  %vm577_vm4 = vmand %vm316_vm0, %vm317_vm1 }
   0xe   : > { %v365_v3 = vpack.c.b16 %v347_v1, %v347_v1  ;;  %v366_v4 = vpack.c.b16 %v348_v2, %v348_v2  ;;  %s564_s23 = scalar_lea.vmem %s643_s3, %s506_s14  ;;  %v488_v6 = vld [vmem:[%s165_s18] sm:$0xff]   ;;  %v503_v7 = vld [vmem:[%s165_s18 + $0x8] sm:$0xff]   ;;  %v504_v8 = vld [vmem:[%s165_s18 + $0x10] sm:$0xff]  }
   0xf   : > { %v489_v9 = vunpack.c.l.bf16 %v488_v6  ;;  %v490_v11 = vunpack.c.h.bf16 %v488_v6  ;;  %v493_v12 = vunpack.c.l.bf16 %v503_v7  ;;  %v494_v13 = vunpack.c.h.bf16 %v503_v7  ;;  %v505_v14 = vld [vmem:[%s165_s18 + $0x18] sm:$0xff]   ;;  %vm583_vm5 = vmand %vm327_vm2, %vm328_vm3 }
  0x10   : > { %401 = vst [vmem:[%s564_s23] sm:$0xf] %v365_v3  ;;  %v497_v15 = vunpack.c.l.bf16 %v504_v8  ;;  %v498_v16 = vunpack.c.h.bf16 %v504_v8  ;;  %v501_v17 = vunpack.c.l.bf16 %v505_v14  ;;  %v502_v18 = vunpack.c.h.bf16 %v505_v14 }
  0x11   : > { %419 = vst [vmem:[%s564_s23 + $0x48] sm:$0xf] %v365_v3  ;;  %v193_v19 = vmul.f32 %v516_v5, %v489_v9  ;;  %v194_v20 = vmul.f32 %v516_v5, %v490_v11  ;;  %v195_v21 = vmul.f32 %v516_v5, %v493_v12  ;;  %v196_v22 = vmul.f32 %v516_v5, %v494_v13 }
  0x12   : > { %402 = vst [vmem:[%s564_s23 + $0x4] sm:$0x1] %v366_v4  ;;  %v197_v23 = vmul.f32 %v516_v5, %v497_v15  ;;  %v198_v24 = vmul.f32 %v516_v5, %v498_v16  ;;  %v199_v25 = vmul.f32 %v516_v5, %v501_v17  ;;  %v200_v26 = vmul.f32 %v516_v5, %v502_v18 }
  0x13   : > { %420 = vst [vmem:[%s564_s23 + $0x4c] sm:$0x1] %v366_v4  ;;  %v204_v27 = vadd.f32 %v517_v10, %v193_v19  ;;  %v205_v28 = vadd.f32 %v517_v10, %v194_v20  ;;  %v206_v29 = vadd.f32 %v517_v10, %v195_v21  ;;  %v207_v30 = vadd.f32 %v517_v10, %v196_v22 }
  0x14   : > { %v208_v31 = vadd.f32 %v517_v10, %v197_v23  ;;  %v209_v32 = vadd.f32 %v517_v10, %v198_v24  ;;  %v210_v33 = vadd.f32 %v517_v10, %v199_v25  ;;  %v211_v34 = vadd.f32 %v517_v10, %v200_v26 }
  0x15   : > { %v212_v35 = vmax.f32 %v204_v27, 0.0  ;;  %v213_v36 = vmax.f32 %v205_v28, 0.0  ;;  %v214_v37 = vmax.f32 %v206_v29, 0.0  ;;  %v215_v38 = vmax.f32 %v207_v30, 0.0 }
  0x16   : > { %v216_v39 = vmax.f32 %v208_v31, 0.0  ;;  %v217_v40 = vmax.f32 %v209_v32, 0.0  ;;  %v218_v41 = vmax.f32 %v210_v33, 0.0  ;;  %v219_v42 = vmax.f32 %v211_v34, 0.0 }
  0x17   : > { %v220_v43 = vpack.c.bf16 %v212_v35, %v212_v35  ;;  %v221_v44 = vpack.c.bf16 %v213_v36, %v213_v36  ;;  %v222_v45 = vpack.c.bf16 %v214_v37, %v214_v37  ;;  %v223_v46 = vpack.c.bf16 %v215_v38, %v215_v38 }
  0x18   : > { %v224_v47 = vpack.c.bf16 %v216_v39, %v216_v39  ;;  %v225_v48 = vpack.c.bf16 %v217_v40, %v217_v40  ;;  %v226_v49 = vpack.c.bf16 %v218_v41, %v218_v41  ;;  %v227_v50 = vpack.c.bf16 %v219_v42, %v219_v42 }
  0x19   : > { %v236_v51 = vunpack.c.l.b16 %v220_v43  ;;  %v237_v52 = vunpack.c.l.b16 %v221_v44  ;;  %v238_v53 = vunpack.c.l.b16 %v222_v45  ;;  %v239_v54 = vunpack.c.l.b16 %v223_v46 }
  0x1a   : > { %v240_v55 = vunpack.c.l.b16 %v224_v47  ;;  %v241_v56 = vunpack.c.l.b16 %v225_v48  ;;  %v242_v57 = vunpack.c.l.b16 %v226_v49  ;;  %v243_v58 = vunpack.c.l.b16 %v227_v50 }
  0x1b   : > { %v244_v59 = vpack.c.b16 %v236_v51, %v236_v51  ;;  %v245_v60 = vpack.c.b16 %v237_v52, %v237_v52  ;;  %v246_v61 = vpack.c.b16 %v238_v53, %v238_v53  ;;  %v247_v62 = vpack.c.b16 %v239_v54, %v239_v54 }
  0x1c   : > { %v248_v63 = vpack.c.b16 %v240_v55, %v240_v55  ;;  %v249_v0 = vpack.c.b16 %v241_v56, %v241_v56  ;;  %v250_v1 = vpack.c.b16 %v242_v57, %v242_v57  ;;  %v573_v2 = vpack.c.b16 %v243_v58, %v243_v58 }
  0x1d   : > { %v253_v3 = vshrl.u32 %v244_v59, 16  ;;  %v256_v4 = vshll.u32 %v244_v59, 16  ;;  %v260_v5 = vshrl.u32 %v245_v60, 16  ;;  %v263_v6 = vshll.u32 %v245_v60, 16 }
  0x1e   : > { %v267_v7 = vshrl.u32 %v246_v61, 16  ;;  %v270_v8 = vshll.u32 %v246_v61, 16  ;;  %v274_v9 = vshrl.u32 %v247_v62, 16  ;;  %v277_v10 = vshll.u32 %v247_v62, 16 }
  0x1f   : > { %v255_v11 = vrot.slane %v253_v3, 7  ;;  %v262_v12 = vrot.slane %v260_v5, 7  ;;  %v281_v13 = vshrl.u32 %v248_v63, 16  ;;  %v284_v14 = vshll.u32 %v248_v63, 16 }
  0x20   : > { %v269_v16 = vrot.slane %v267_v7, 7  ;;  %v276_v17 = vrot.slane %v274_v9, 7  ;;  %v288_v18 = vshrl.u32 %v249_v0, 16  ;;  %v291_v19 = vshll.u32 %v249_v0, 16 }
  0x21   : > { %v258_v20 = vor.u32 %v256_v4, %v255_v11  ;;  %v265_v22 = vor.u32 %v263_v6, %v262_v12  ;;  %v283_v23 = vrot.slane %v281_v13, 7  ;;  %v295_v24 = vshrl.u32 %v250_v1, 16 }
  0x22   : > { %v272_v25 = vor.u32 %v270_v8, %v269_v16  ;;  %v279_v26 = vor.u32 %v277_v10, %v276_v17  ;;  %v290_v27 = vrot.slane %v288_v18, 7  ;;  %v298_v28 = vshll.u32 %v250_v1, 16 }
  0x23   : > { %v319_v29 = vsel %vm577_vm4, 0, %v258_v20  ;;  %v320_v30 = vsel %vm577_vm4, 0, %v265_v22  ;;  %v286_v31 = vor.u32 %v284_v14, %v283_v23  ;;  %v297_v32 = vrot.slane %v295_v24, 7 }
  0x24   : > { %v330_v33 = vsel %vm583_vm5, %v319_v29, 0  ;;  %v331_v34 = vsel %vm583_vm5, %v320_v30, 0  ;;  %v321_v35 = vsel %vm577_vm4, 0, %v272_v25  ;;  %v322_v36 = vsel %vm577_vm4, 0, %v279_v26 }
  0x25   : > { %v349_v37 = vunpack.c.l.b16 %v330_v33  ;;  %v350_v38 = vunpack.c.h.b16 %v330_v33  ;;  %v351_v39 = vunpack.c.l.b16 %v331_v34  ;;  %v352_v40 = vunpack.c.h.b16 %v331_v34 }
  0x26   : > { %v332_v41 = vsel %vm583_vm5, %v321_v35, 0  ;;  %v333_v42 = vsel %vm583_vm5, %v322_v36, 0  ;;  %v323_v43 = vsel %vm577_vm4, 0, %v286_v31  ;;  %v293_v44 = vor.u32 %v291_v19, %v290_v27 }
  0x27   : > { %v367_v45 = vpack.c.b16 %v349_v37, %v349_v37  ;;  %v368_v46 = vpack.c.b16 %v350_v38, %v350_v38  ;;  %v369_v47 = vpack.c.b16 %v351_v39, %v351_v39  ;;  %v370_v48 = vpack.c.b16 %v352_v40, %v352_v40 }
  0x28   : > { %v353_v49 = vunpack.c.l.b16 %v332_v41  ;;  %v354_v50 = vunpack.c.h.b16 %v332_v41  ;;  %v355_v51 = vunpack.c.l.b16 %v333_v42  ;;  %v356_v52 = vunpack.c.h.b16 %v333_v42 }
  0x29   : > { %403 = vst [vmem:[%s564_s23 + $0x8] sm:$0xf] %v367_v45  ;;  %v334_v53 = vsel %vm583_vm5, %v323_v43, 0  ;;  %v324_v54 = vsel %vm577_vm4, 0, %v293_v44  ;;  %v300_v55 = vor.u32 %v298_v28, %v297_v32  ;;  %v302_v56 = vshrl.u32 %v573_v2, 16 }
  0x2a   : > { %404 = vst [vmem:[%s564_s23 + $0xc] sm:$0x1] %v368_v46  ;;  %v371_v57 = vpack.c.b16 %v353_v49, %v353_v49  ;;  %v372_v58 = vpack.c.b16 %v354_v50, %v354_v50  ;;  %v373_v59 = vpack.c.b16 %v355_v51, %v355_v51  ;;  %v374_v60 = vpack.c.b16 %v356_v52, %v356_v52 }
  0x2b   : > { %405 = vst [vmem:[%s564_s23 + $0x10] sm:$0xf] %v369_v47  ;;  %v357_v61 = vunpack.c.l.b16 %v334_v53  ;;  %v358_v62 = vunpack.c.h.b16 %v334_v53  ;;  %v335_v63 = vsel %vm583_vm5, %v324_v54, 0  ;;  %v325_v0 = vsel %vm577_vm4, 0, %v300_v55 }
  0x2c   : > { %406 = vst [vmem:[%s564_s23 + $0x14] sm:$0x1] %v370_v48  ;;  %v359_v1 = vunpack.c.l.b16 %v335_v63  ;;  %v360_v3 = vunpack.c.h.b16 %v335_v63  ;;  %v336_v4 = vsel %vm583_vm5, %v325_v0, 0  ;;  %v304_v5 = vrot.slane %v302_v56, 7 }
  0x2d   : > { %407 = vst [vmem:[%s564_s23 + $0x18] sm:$0xf] %v371_v57  ;;  %v375_v6 = vpack.c.b16 %v357_v61, %v357_v61  ;;  %v361_v7 = vunpack.c.l.b16 %v336_v4  ;;  %v376_v8 = vpack.c.b16 %v358_v62, %v358_v62  ;;  %v362_v9 = vunpack.c.h.b16 %v336_v4 }
  0x2e   : > { %408 = vst [vmem:[%s564_s23 + $0x1c] sm:$0x1] %v372_v58  ;;  %v305_v10 = vshll.u32 %v573_v2, 16  ;;  %v377_v11 = vpack.c.b16 %v359_v1, %v359_v1  ;;  %v378_v12 = vpack.c.b16 %v360_v3, %v360_v3 }
  0x2f   : > { %409 = vst [vmem:[%s564_s23 + $0x20] sm:$0xf] %v373_v59  ;;  %v379_v14 = vpack.c.b16 %v361_v7, %v361_v7  ;;  %v380_v16 = vpack.c.b16 %v362_v9, %v362_v9 }
  0x30   : > { %410 = vst [vmem:[%s564_s23 + $0x24] sm:$0x1] %v374_v60  ;;  %v307_v13 = vor.u32 %v305_v10, %v304_v5 }
  0x31   : > { %411 = vst [vmem:[%s564_s23 + $0x28] sm:$0xf] %v375_v6 }
  0x32   : > { %412 = vst [vmem:[%s564_s23 + $0x2c] sm:$0x1] %v376_v8  ;;  %v326_v17 = vsel %vm577_vm4, 0, %v307_v13 }
  0x33   : > { %413 = vst [vmem:[%s564_s23 + $0x30] sm:$0xf] %v377_v11  ;;  %v337_v2 = vsel %vm583_vm5, %v326_v17, 0 }
  0x34   : > { %414 = vst [vmem:[%s564_s23 + $0x34] sm:$0x1] %v378_v12  ;;  %v363_v18 = vunpack.c.l.b16 %v337_v2  ;;  %v364_v19 = vunpack.c.h.b16 %v337_v2 }
  0x35   : > { %415 = vst [vmem:[%s564_s23 + $0x38] sm:$0xf] %v379_v14 }
  0x36   : > { %416 = vst [vmem:[%s564_s23 + $0x3c] sm:$0x1] %v380_v16  ;;  %v381_v20 = vpack.c.b16 %v363_v18, %v363_v18  ;;  %v382_v22 = vpack.c.b16 %v364_v19, %v364_v19 }
  0x38   : > { %417 = vst [vmem:[%s564_s23 + $0x40] sm:$0xf] %v381_v20 }
  0x39   : > { %418 = vst [vmem:[%s564_s23 + $0x44] sm:$0x1] %v382_v22 }
  0x3a PF: > { %s13_s12 = sadd.s32 1, %s524_s12  }
  0x3b   : > { %p10_p4 = scmp.ge.s32.totalorder %s13_s12, 4  }
  0x3d   :  { %12 = sbr.rel (!%p10_p4) target bundleno = 1 (0x1), region = 62 }

// kernel: down_block_forward.4
= control target key start
LH: loop header
LB: loop body
LE: loop exit
PB: predicated region body
PF: predicated region fallthrough
CT: control target
= control target key end

     0   :  { %s1223_s15 = smov 0   ;;  %s1603_s0 = inlined_call_operand.vmem [shape: bf16[2,10,10,4], index: 0, kind: input, shape index: {}]   ;;  %s1604_s1 = inlined_call_operand.vmem [shape: bf16[36,128], index: 1, kind: input, shape index: {}]   ;;  %s1605_s2 = inlined_call_operand.vmem [shape: f32[1,128], index: 2, kind: input, shape index: {}]   ;;  %s1606_s3 = inlined_call_operand.vmem [shape: bf16[2,8,8,128], index: 3, kind: output, shape index: {0}]   ;;  %s1607_s4 = inlined_call_operand.vmem [shape: f32[2,1,2,128], index: 4, kind: output, shape index: {1}]  }
   0x1 LB: > { %s1096_s16 = sadd.s32 4294967295, %s1196_s15   ;;  %p1100_p0 = scmp.ge.s32.totalorder %s1196_s15, 1  ;;  %s1196_s15 = sphi %s1223_s15, %s15_s15  }
   0x2   : > { %p165_p1 = scmp.lt.s32.totalorder %s1196_s15, 3 }
   0x4   : > { %p166_p2 = pnand %p1100_p0, %p165_p1 }
   0x5   : > { %p195_p3 = scmp.lt.s32.totalorder (!%p166_p2), %s1096_s16, 1 }
   0x6   : > { %169 = sbr.rel (%p166_p2) target bundleno = 332 (0x14c), region = 32 }
   0xb   : > { %v346_v0 = vld [vmem:[%s1604_s1] sm:$0xc]  ;;  %s1613_s16 = smov (!%p195_p3, %s1096_s16), 1  ;;  %v516_v3 = vld [vmem:[%s1604_s1 + $0x4] sm:$0x3]  ;;  %vm376_vm0 = vcmask 1041408  }
   0xc   : > { %v360_v1 = vunpack.c.l.b16 %v346_v0  ;;  %s1180_s21 = smul.u32 80, %s1613_s16  ;;  %vm231_vm1 = vsmask.f32 3328  ;;  %v581_v5 = vld [vmem:[%s1604_s1 + $0x4] sm:$0xc]  ;;  %v542_v7 = vsel %vm376_vm0, %v516_v3, 0 }
   0xd   : > { %v230_v6 = vld [vmem:[%s1604_s1] sm:$0x3]  ;;  %vm232_vm2 = vsmask.f32 7440  ;;  %v589_v8 = vunpack.c.l.b16 %v581_v5  ;;  %v658_v10 = vld [vmem:[%s1604_s1 + $0x8] sm:$0x3] }
   0xe   : > { %v361_v2 = vpack.c.b16 %v360_v1, %v360_v1  ;;  %s1249_s28 = scalar_lea.vmem %s1603_s0, %s1180_s21  ;;  %v442_v9 = vsel %vm376_vm0, %v230_v6, 0  ;;  %v677_v14 = vsel %vm376_vm0, %v658_v10, 0  ;;  %vm363_vm3 = vcmask 31744   ;;  %vm1295_vm4 = vmor %vm231_vm1, %vm232_vm2  ;;  %s1153_s17 = sshll.u32 %s1613_s16, 5 }
   0xf   : > { %v1258_v12 = vld [vmem:[%s1249_s28 + $0x10] sm:$0xf]  ;;  %v1261_v13 = vld [vmem:[%s1249_s28 + $0x14] sm:$0x1]  ;;  %v1265_v15 = vld [vmem:[%s1249_s28 + $0x18] sm:$0xf]  ;;  %v1285_v28 = vpack.c.b16 %v589_v8, %v589_v8  ;;  %s1568_s20 = scalar_lea.vmem %s1606_s3, %s1153_s17 }
  0x10   : > { %v362_v4 = vrot.slane %v361_v2, 2  ;;  %v1268_v16 = vld [vmem:[%s1249_s28 + $0x1c] sm:$0x1]  ;;  %v263_v17 = vshrl.u32 %v1258_v12, 16  ;;  %v266_v18 = vshll.u32 %v1258_v12, 16  ;;  %v272_v19 = vshll.u32 %v1261_v13, 16 }
  0x11   : > { %v277_v20 = vshrl.u32 %v1265_v15, 16  ;;  %v280_v21 = vshll.u32 %v1265_v15, 16  ;;  %v286_v22 = vshll.u32 %v1268_v16, 16  ;;  %v1277_v23 = vld [vmem:[%s1249_s28 + $0x20] sm:$0xf]  ;;  %vm481_vm5 = vcmask 1042432  }
  0x12   : > { %v378_v11 = vsel %vm376_vm0, %v362_v4, 0  ;;  %v265_v24 = vrot.slane %v263_v17, 4  ;;  %v268_v25 = vrot.slane %v266_v18, 5  ;;  %v1280_v26 = vld [vmem:[%s1249_s28 + $0x24] sm:$0x1]  ;;  %v274_v29 = vrot.slane %v272_v19, 5 }
  0x13   : > { %1177 = vmatpush.bf16.msra.mxu1 %v378_v11  ;;  %1178 = vmatpush.bf16.msra.mxu2 %v378_v11  ;;  %v1283_v27 = vld [vmem:[%s1249_s28 + $0x28] sm:$0xf]  ;;  %v279_v30 = vrot.slane %v277_v20, 4  ;;  %v282_v31 = vrot.slane %v280_v21, 5  ;;  %v288_v32 = vrot.slane %v286_v22, 5  ;;  %v291_v35 = vshrl.u32 %v1277_v23, 16 }
  0x14   : > { %1179 = vmatpush.bf16.msra.mxu3 %v378_v11  ;;  %387 = vmatpush.bf16.msra.mxu0 %v378_v11  ;;  %v1288_v33 = vld [vmem:[%s1249_s28 + $0x2c] sm:$0x1]  ;;  %v269_v34 = vor.u32 %v268_v25, %v265_v24  ;;  %v294_v36 = vshll.u32 %v1277_v23, 16  ;;  %v300_v37 = vshll.u32 %v1280_v26, 16  ;;  %v305_v40 = vshrl.u32 %v1283_v27, 16  ;;  %s1104_s21 = sshll.u32 %s1613_s16, 1 }
  0x15   : > { %v283_v39 = vor.u32 %v282_v31, %v279_v30  ;;  %v308_v41 = vshll.u32 %v1283_v27, 16  ;;  %v314_v42 = vshll.u32 %v1288_v33, 16  ;;  %v1303_v43 = vld [vmem:[%s1249_s28 + $0x30] sm:$0xf]  ;;  %v293_v45 = vrot.slane %v291_v35, 4  ;;  %s208_s24 = scalar_lea.vmem %s1607_s4, %s1104_s21 }
  0x16   : > { %v270_v44 = vrot.slane %v269_v34, 4  ;;  %v296_v46 = vrot.slane %v294_v36, 5  ;;  %v302_v47 = vrot.slane %v300_v37, 5  ;;  %v1306_v48 = vld [vmem:[%s1249_s28 + $0x34] sm:$0x1]  ;;  %v307_v50 = vrot.slane %v305_v40, 4 }
  0x17   : > { %551 = vmatpush.bf16.msrb.mxu2 %v542_v7  ;;  %451 = vmatpush.bf16.msrb.mxu1 %v442_v9  ;;  %v284_v49 = vrot.slane %v283_v39, 4  ;;  %v310_v51 = vrot.slane %v308_v41, 5  ;;  %v316_v52 = vrot.slane %v314_v42, 5  ;;  %v1311_v55 = vld [vmem:[%s1249_s28 + $0x38] sm:$0xf]  ;;  %v319_v56 = vshrl.u32 %v1303_v43, 16 }
  0x18   : > { %686 = vmatpush.bf16.msrb.mxu0 %v677_v14  ;;  %v275_v53 = vsel %vm1295_vm4, %v270_v44, %v274_v29  ;;  %v297_v54 = vor.u32 %v296_v46, %v293_v45  ;;  %v322_v57 = vshll.u32 %v1303_v43, 16  ;;  %v1320_v61 = vld [vmem:[%s1249_s28 + $0x3c] sm:$0x1]  ;;  %v328_v62 = vshll.u32 %v1306_v48, 16  ;;  %v1328_v7 = vld [vmem:[%s1249_s28] sm:$0xf] }
  0x19   : > { %v289_v58 = vsel %vm1295_vm4, %v284_v49, %v288_v32  ;;  %v1317_v59 = vunpack.c.l.b16 %v275_v53  ;;  %v311_v60 = vor.u32 %v310_v51, %v307_v50  ;;  %vm482_vm6 = vcmask 1046532   ;;  %v211_v14 = vld [vmem:[%s1249_s28 + $0x4] sm:$0x1]  ;;  %v1339_v17 = vld [vmem:[%s1249_s28 + $0x8] sm:$0xf] }
  0x1a   : > { %v1323_v63 = vunpack.c.l.b16 %v289_v58  ;;  %v298_v0 = vrot.slane %v297_v54, 4  ;;  %v321_v1 = vrot.slane %v319_v56, 4  ;;  %v324_v2 = vrot.slane %v322_v57, 5  ;;  %v213_v31 = vld [vmem:[%s1249_s28 + $0xc] sm:$0x1]  ;;  %vm1375_vm7 = vmor %vm481_vm5, %vm482_vm6 }
  0x1b   : > { %v312_v3 = vrot.slane %v311_v60, 4  ;;  %v330_v4 = vrot.slane %v328_v62, 5  ;;  %v333_v5 = vshrl.u32 %v1311_v55, 16  ;;  %v336_v6 = vshll.u32 %v1311_v55, 16  ;;  %v783_v56 = vld [vmem:[%s1604_s1 + $0xc] sm:$0x3] }
  0x1c   : > { %v1332_v8 = vpack.c.b16 %v1323_v63, %v1317_v59  ;;  %v303_v9 = vsel %vm1295_vm4, %v298_v0, %v302_v47  ;;  %v325_v10 = vor.u32 %v324_v2, %v321_v1  ;;  %v342_v11 = vshll.u32 %v1320_v61, 16 }
  0x1d   : > { %v317_v18 = vsel %vm1295_vm4, %v312_v3, %v316_v52  ;;  %v1343_v19 = vunpack.c.l.b16 %v303_v9  ;;  %v335_v20 = vrot.slane %v333_v5, 4  ;;  %v338_v21 = vrot.slane %v336_v6, 5 }
  0x1e   : > { %1106 = vmatmul.msk.bf16.vlgmr.msra.gmra.mxu1 %vm363_vm3, %v1332_v8  ;;  %v1347_v22 = vunpack.c.l.b16 %v317_v18  ;;  %v326_v24 = vrot.slane %v325_v10, 4  ;;  %v344_v25 = vrot.slane %v342_v11, 5  ;;  %v235_v29 = vshrl.u32 %v1328_v7, 16  ;;  %v721_v11 = vld [vmem:[%s1604_s1 + $0x8] sm:$0xc] }
  0x1f   : > { %v339_v30 = vor.u32 %v338_v21, %v335_v20  ;;  %v238_v32 = vshll.u32 %v1328_v7, 16  ;;  %v244_v34 = vshll.u32 %v211_v14, 16  ;;  %v249_v35 = vshrl.u32 %v1339_v17, 16  ;;  %v899_v21 = vld [vmem:[%s1604_s1 + $0x10] sm:$0x3] }
  0x20   : > { %v1355_v36 = vpack.c.b16 %v1347_v22, %v1343_v19  ;;  %v331_v37 = vsel %vm1295_vm4, %v326_v24, %v330_v4  ;;  %v237_v39 = vrot.slane %v235_v29, 4  ;;  %v252_v40 = vshll.u32 %v1339_v17, 16  ;;  %v844_v4 = vld [vmem:[%s1604_s1 + $0xc] sm:$0xc] }
  0x21   : > { %v340_v41 = vrot.slane %v339_v30, 4  ;;  %v1360_v42 = vunpack.c.l.b16 %v331_v37  ;;  %v240_v44 = vrot.slane %v238_v32, 5  ;;  %v246_v45 = vrot.slane %v244_v34, 5 }
  0x22   : > { %1107 = vmatmul.msk.bf16.vlgmr.msra.gmra.mxu2 %vm363_vm3, %v1355_v36  ;;  %v251_v46 = vrot.slane %v249_v35, 4  ;;  %v254_v47 = vrot.slane %v252_v40, 5  ;;  %v258_v49 = vshll.u32 %v213_v31, 16  ;;  %v486_v50 = vrot.slane %v211_v14, 5 }
  0x23   : > { %v345_v51 = vsel %vm1295_vm4, %v340_v41, %v344_v25  ;;  %v241_v52 = vor.u32 %v240_v44, %v237_v39  ;;  %v490_v53 = vrot.slane %v213_v31, 5  ;;  %v591_v54 = vrot.slane %v1285_v28, 2 }
  0x24   : > { %v1370_v57 = vunpack.c.l.b16 %v345_v51  ;;  %v255_v58 = vor.u32 %v254_v47, %v251_v46  ;;  %v260_v60 = vrot.slane %v258_v49, 5  ;;  %v417_v62 = vunpack.c.l.b16 %v1328_v7 }
  0x25   : > { %v242_v1 = vrot.slane %v241_v52, 4  ;;  %v605_v2 = vsel %vm376_vm0, %v591_v54, 0  ;;  %v418_v28 = vunpack.c.l.b16 %v1339_v17  ;;  %v1113_v3 = vrot.slane %v1328_v7, 9 }
  0x26   : > { %v1387_v5 = vpack.c.b16 %v1370_v57, %v1360_v42  ;;  %v256_v6 = vrot.slane %v255_v58, 4  ;;  %614 = vmatpush.bf16.msrb.mxu3 %v605_v2  ;;  %v1114_v9 = vrot.slane %v1339_v17, 9  ;;  %v791_v10 = vsel %vm376_vm0, %v783_v56, 0 }
  0x27   : > { %v247_v7 = vsel %vm1295_vm4, %v242_v1, %v246_v45  ;;  %v487_v14 = vsel %vm1375_vm7, %v1113_v3, %v486_v50  ;;  %800 = vmatpush.bf16.msra.mxu2 %v791_v10  ;;  %v848_v25 = vunpack.c.l.b16 %v844_v4  ;;  %v728_v29 = vunpack.c.l.b16 %v721_v11 }
  0x28   : > { %1108 = vmatmul.msk.bf16.vlgmr.msra.gmra.mxu3 %vm363_vm3, %v1387_v5  ;;  %v261_v18 = vsel %vm1295_vm4, %v256_v6, %v260_v60  ;;  %v347_v17 = vunpack.c.l.b16 %v247_v7  ;;  %v1404_v20 = vsel %vm1375_vm7, %v1114_v9, %v490_v53  ;;  %v425_v30 = vpack.c.b16 %v418_v28, %v417_v62 }
  0x29   : > { %v348_v24 = vunpack.c.l.b16 %v261_v18  ;;  %v517_v31 = vunpack.c.l.b16 %v487_v14  ;;  %v518_v32 = vunpack.c.l.b16 %v1404_v20  ;;  %v849_v35 = vpack.c.b16 %v848_v25, %v848_v25  ;;  %v226_v25 = vld [vmem:[%s1249_s28 + $0x40] sm:$0xf]  ;;  %v228_v20 = vld [vmem:[%s1249_s28 + $0x48] sm:$0xf] }
  0x2a   : > { %v906_v37 = vsel %vm376_vm0, %v899_v21, 0  ;;  %v729_v39 = vpack.c.b16 %v728_v29, %v728_v29  ;;  %v419_v46 = vunpack.c.l.b16 %v1258_v12  ;;  %v1115_v49 = vrot.slane %v1258_v12, 9 }
  0x2b   : > { %v355_v34 = vpack.c.b16 %v348_v24, %v347_v17  ;;  %v850_v40 = vrot.slane %v849_v35, 2  ;;  %v525_v41 = vpack.c.b16 %v518_v32, %v517_v31  ;;  %v494_v50 = vrot.slane %v1261_v13, 5 }
  0x2c   : > { %v730_v44 = vrot.slane %v729_v39, 2  ;;  %v1116_v51 = vrot.slane %v1265_v15, 9  ;;  %v498_v52 = vrot.slane %v1268_v16, 5  ;;  %v584_v53 = vpack.c.b16 %v419_v46, %v418_v28 }
  0x2d   : > { %1105 = vmatmul.msk.bf16.vlgmr.msra.gmra.mxu0 %vm363_vm3, %v355_v34  ;;  %v855_v45 = vsel %vm376_vm0, %v850_v40, 0  ;;  %v420_v54 = vunpack.c.l.b16 %v1265_v15  ;;  %v1426_v56 = vsel %vm1375_vm7, %v1115_v49, %v494_v50  ;;  %v660_v12 = vpack.c.b16 %v1317_v59, %v348_v24 }
  0x2e   : > { %1109 = vmatmul.msk.bf16.vlgmr.msrb.gmra.mxu1 %vm363_vm3, %v425_v30  ;;  %915 = vmatpush.bf16.msra.mxu0 %v906_v37  ;;  %v744_v47 = vsel %vm376_vm0, %v730_v44, 0  ;;  %v1430_v58 = vsel %vm1375_vm7, %v1116_v51, %v498_v52  ;;  %v519_v13 = vunpack.c.l.b16 %v1426_v56  ;;  %v1119_v62 = vrot.slane %v1303_v43, 9  ;;  %v227_v37 = vld [vmem:[%s1249_s28 + $0x44] sm:$0x1]  ;;  %v229_v56 = vld [vmem:[%s1249_s28 + $0x4c] sm:$0x1] }
  0x2f   : > { %864 = vmatpush.bf16.msra.mxu3 %v855_v45  ;;  %753 = vmatpush.bf16.msra.mxu1 %v744_v47  ;;  %v520_v60 = vunpack.c.l.b16 %v1430_v58  ;;  %v426_v16 = vpack.c.b16 %v420_v54, %v419_v46  ;;  %v510_v1 = vrot.slane %v1306_v48, 5  ;;  %v1120_v2 = vrot.slane %v1311_v55, 9 }
  0x30   : > { %v514_v59 = vrot.slane %v1320_v61, 5  ;;  %v421_v28 = vunpack.c.l.b16 %v1277_v23  ;;  %v1117_v48 = vrot.slane %v1277_v23, 9  ;;  %v502_v10 = vrot.slane %v1280_v26, 5 }
  0x31   : > { %v526_v15 = vpack.c.b16 %v520_v60, %v519_v13  ;;  %v511_v3 = vsel %vm1375_vm7, %v1119_v62, %v510_v1  ;;  %v1118_v61 = vrot.slane %v1283_v27, 9  ;;  %v506_v11 = vrot.slane %v1288_v33, 5 }
  0x32   : > { %1121 = vmatmul.msk.bf16.vlgmr.msrb.gmra.mxu2 %vm363_vm3, %v525_v41  ;;  %v1449_v4 = vsel %vm1375_vm7, %v1120_v2, %v514_v59  ;;  %v523_v6 = vunpack.c.l.b16 %v511_v3  ;;  %v585_v14 = vpack.c.b16 %v421_v28, %v420_v54  ;;  %v422_v18 = vunpack.c.l.b16 %v1283_v27 }
  0x33   : > { %v524_v9 = vunpack.c.l.b16 %v1449_v4  ;;  %v503_v17 = vsel %vm1375_vm7, %v1117_v48, %v502_v10  ;;  %v507_v23 = vsel %vm1375_vm7, %v1118_v61, %v506_v11  ;;  %v661_v26 = vpack.c.b16 %v1343_v19, %v1323_v63 }
  0x34   : > { %v427_v33 = vpack.c.b16 %v422_v18, %v421_v28  ;;  %v521_v21 = vunpack.c.l.b16 %v503_v17  ;;  %v522_v24 = vunpack.c.l.b16 %v507_v23  ;;  %v423_v29 = vunpack.c.l.b16 %v1303_v43 }
  0x35   : > { %v1459_v7 = vpack.c.b16 %v524_v9, %v523_v6  ;;  %v645_v30 = vshrl.u32 %v226_v25, 16  ;;  %v648_v31 = vshll.u32 %v226_v25, 16  ;;  %v424_v35 = vunpack.c.l.b16 %v1311_v55 }
  0x36   : > { %v527_v27 = vpack.c.b16 %v522_v24, %v521_v21  ;;  %v586_v34 = vpack.c.b16 %v423_v29, %v422_v18  ;;  %v662_v39 = vpack.c.b16 %v1360_v42, %v1347_v22  ;;  %v654_v44 = vshll.u32 %v227_v37, 16 }
  0x37   : > { %v647_v63 = vrot.slane %v645_v30, 4  ;;  %v650_v19 = vrot.slane %v648_v31, 5  ;;  %v428_v40 = vpack.c.b16 %v424_v35, %v423_v29  ;;  %v583_v46 = vunpack.c.l.b16 %v226_v25 }
  0x38   : > { %1125 = vmatmul.msk.bf16.vlgmr.msrb.gmra.mxu3 %vm363_vm3, %v584_v53  ;;  %v656_v45 = vrot.slane %v654_v44, 5  ;;  %v723_v42 = vpack.c.b16 %v519_v13, %v518_v32  ;;  %v724_v50 = vpack.c.b16 %v521_v21, %v520_v60  ;;  %v831_v32 = vshrl.u32 %v228_v20, 16 }
  0x39   : > { %v651_v41 = vor.u32 %v650_v19, %v647_v63  ;;  %v587_v47 = vpack.c.b16 %v583_v46, %v424_v35  ;;  %v834_v51 = vshll.u32 %v228_v20, 16  ;;  %v719_v52 = vrot.slane %v227_v37, 5 }
  0x3a   : > { %v833_v53 = vrot.slane %v831_v32, 4  ;;  %v785_v62 = vunpack.c.l.b16 %v228_v20  ;;  %v1146_v28 = vrot.slane %v228_v20, 9  ;;  %v897_v3 = vrot.slane %v229_v56, 5 }
  0x3b   : > { %v652_v43 = vrot.slane %v651_v41, 4  ;;  %v836_v54 = vrot.slane %v834_v51, 5  ;;  %vm1007_vm8 = vcmask 1040384  }
  0x3c   : > { %v786_v59 = vpack.c.b16 %v785_v62, %v583_v46 }
  0x3d   : > { %1129 = vmatmul.msk.bf16.vlgmr.msrb.gmra.mxu0 %vm363_vm3, %v660_v12  ;;  %v657_v55 = vsel %vm1295_vm4, %v652_v43, %v656_v45  ;;  %v837_v12 = vor.u32 %v836_v54, %v833_v53 }
  0x3e   : > { %1110 = vmatmul.msk.bf16.gmra.mxu1 %vm363_vm3, %v426_v16  ;;  %v659_v49 = vunpack.c.l.b16 %v657_v55 }
  0x3f   : > { %v838_v60 = vrot.slane %v837_v12, 4 }
  0x40   : > { %v663_v22 = vpack.c.b16 %v659_v49, %v1370_v57  ;;  %v725_v57 = vpack.c.b16 %v523_v6, %v522_v24 }
  0x42   : > { %1122 = vmatmul.msk.bf16.gmra.mxu2 %vm363_vm3, %v526_v15 }
  0x48   : > { %1126 = vmatmul.msk.bf16.gmra.mxu3 %vm363_vm3, %v585_v14 }
  0x4d   : > { %1130 = vmatmul.msk.bf16.gmra.mxu0 %vm363_vm3, %v661_v26 }
  0x4e   : > { %1111 = vmatmul.msk.bf16.gmra.mxu1 %vm363_vm3, %v427_v33 }
  0x52   : > { %1123 = vmatmul.msk.bf16.gmra.mxu2 %vm363_vm3, %v527_v27 }
  0x58   : > { %1127 = vmatmul.msk.bf16.gmra.mxu3 %vm363_vm3, %v586_v34 }
  0x5d   : > { %1131 = vmatmul.msk.bf16.gmra.mxu0 %vm363_vm3, %v662_v39 }
  0x5e   : > { %1112 = vmatmul.msk.bf16.gmra.mxu1 %vm363_vm3, %v428_v40 }
  0x62   : > { %1124 = vmatmul.msk.bf16.gmra.mxu2 %vm363_vm3, %v1459_v7 }
  0x68   : > { %1128 = vmatmul.msk.bf16.gmra.mxu3 %vm363_vm3, %v587_v47 }
  0x6d   : > { %1132 = vmatmul.msk.bf16.gmra.mxu0 %vm363_vm3, %v663_v22 }
  0x6e   : > { %1134 = vmatmul.msk.bf16.vlgmr.msra.gmra.mxu1 %vm363_vm3, %v723_v42 }
  0x72   : > { %1138 = vmatmul.msk.bf16.vlgmr.msra.gmra.mxu2 %vm363_vm3, %v426_v16 }
  0x78   : > { %1142 = vmatmul.msk.bf16.vlgmr.msra.gmra.mxu3 %vm363_vm3, %v1332_v8  ;;  %v1133_v8 = vrot.slane %v226_v25, 9 }
  0x7a   : > { %v720_v58 = vsel %vm1375_vm7, %v1133_v8, %v719_v52 }
  0x7b   : > { %v722_v13 = vunpack.c.l.b16 %v720_v58 }
  0x7d   : > { %1147 = vmatmul.msk.bf16.vlgmr.msra.gmra.mxu0 %vm363_vm3, %v526_v15  ;;  %v726_v15 = vpack.c.b16 %v722_v13, %v524_v9 }
  0x7e   : > { %1135 = vmatmul.msk.bf16.gmra.mxu1 %vm363_vm3, %v724_v50 }
  0x82   : > { %1139 = vmatmul.msk.bf16.gmra.mxu2 %vm363_vm3, %v427_v33 }
  0x88   : > { %1143 = vmatmul.msk.bf16.gmra.mxu3 %vm363_vm3, %v1355_v36  ;;  %v840_v36 = vshll.u32 %v229_v56, 16 }
  0x8a   : > { %v842_v16 = vrot.slane %v840_v36, 5 }
  0x8c   : > { %v843_v2 = vsel %vm1295_vm4, %v838_v60, %v842_v16 }
  0x8d   : > { %1148 = vmatmul.msk.bf16.gmra.mxu0 %vm363_vm3, %v527_v27  ;;  %v845_v6 = vunpack.c.l.b16 %v843_v2 }
  0x8e   : > { %1136 = vmatmul.msk.bf16.gmra.mxu1 %vm363_vm3, %v725_v57 }
  0x8f   : > { %v846_v9 = vpack.c.b16 %v845_v6, %v659_v49 }
  0x92   : > { %1140 = vmatmul.msk.bf16.gmra.mxu2 %vm363_vm3, %v428_v40 }
  0x98   : > { %1144 = vmatmul.msk.bf16.gmra.mxu3 %vm363_vm3, %v1387_v5  ;;  %v898_v5 = vsel %vm1375_vm7, %v1146_v28, %v897_v3 }
  0x99   : > { %v900_v48 = vunpack.c.l.b16 %v898_v5 }
  0x9b   : > { %v394_v1 = vpop.f32.mrf.mxu1  ;;  %v901_v38 = vpack.c.b16 %v900_v48, %v722_v13 }
  0x9d   : > { %1149 = vmatmul.msk.bf16.gmra.mxu0 %vm363_vm3, %v1459_v7 }
  0x9e   : > { %1137 = vmatmul.msk.bf16.gmra.mxu1 %vm363_vm3, %v726_v15 }
  0xa2   : > { %1141 = vmatmul.msk.bf16.gmra.mxu2 %vm363_vm3, %v786_v59 }
  0xa3   : > { %v1520_v4 = vpop.f32.mrf.mxu1 }
  0xa5   : > { %v399_v10 = vpop.f32.mrf.mxu2 }
  0xa8   : > { %1145 = vmatmul.msk.bf16.gmra.mxu3 %vm363_vm3, %v846_v9 }
  0xaa   : > { %v389_v61 = vpop.f32.mrf.mxu0 }
  0xab   : > { %v1523_v11 = vpop.f32.mrf.mxu3  ;;  %v453_v7 = vpop.f32.mrf.mxu1 }
  0xac   : > { %v454_v14 = vadd.f32 %v453_v7, %v389_v61 }
  0xad   : > { %1150 = vmatmul.msk.bf16.gmra.mxu0 %vm363_vm3, %v901_v38  ;;  %v1526_v18 = vpop.f32.mrf.mxu2 }
  0xb2   : > { %v391_v17 = vpop.f32.mrf.mxu0 }
  0xb3   : > { %v1528_v0 = vpop.f32.mrf.mxu3  ;;  %v455_v23 = vpop.f32.mrf.mxu1 }
  0xb4   : > { %v456_v60 = vadd.f32 %v455_v23, %v391_v17  ;;  %v1560_v23 = vld [vmem:[%s1605_s2] ss:$0 sm:$0xff] }
  0xb5   : > { %v553_v26 = vpop.f32.mrf.mxu2 }
  0xb6   : > { %v573_v33 = vadd.f32 %v553_v26, %v454_v14 }
  0xba   : > { %v688_v21 = vpop.f32.mrf.mxu0 }
  0xbb   : > { %v616_v24 = vpop.f32.mrf.mxu3  ;;  %v458_v27 = vpop.f32.mrf.mxu1 }
  0xbc   : > { %v636_v25 = vadd.f32 %v616_v24, %v573_v33  ;;  %v459_v29 = vadd.f32 %v458_v27, %v394_v1 }
  0xbd   : > { %v555_v30 = vpop.f32.mrf.mxu2 }
  0xbe   : > { %v708_v31 = vadd.f32 %v688_v21, %v636_v25  ;;  %v574_v1 = vadd.f32 %v555_v30, %v456_v60 }
  0xc2   : > { %v690_v34 = vpop.f32.mrf.mxu0 }
  0xc3   : > { %v618_v35 = vpop.f32.mrf.mxu3  ;;  %v460_v63 = vpop.f32.mrf.mxu1 }
  0xc4   : > { %v637_v59 = vadd.f32 %v618_v35, %v574_v1  ;;  %v461_v14 = vadd.f32 %v460_v63, %v1520_v4 }
  0xc5   : > { %v558_v19 = vpop.f32.mrf.mxu2 }
  0xc6   : > { %v575_v37 = vadd.f32 %v558_v19, %v459_v29  ;;  %v709_v48 = vadd.f32 %v690_v34, %v637_v59 }
  0xca   : > { %v693_v39 = vpop.f32.mrf.mxu0 }
  0xcb   : > { %v621_v40 = vpop.f32.mrf.mxu3  ;;  %v463_v41 = vpop.f32.mrf.mxu1 }
  0xcc   : > { %v638_v44 = vadd.f32 %v621_v40, %v575_v37  ;;  %v464_v43 = vadd.f32 %v463_v41, %v399_v10 }
  0xcd   : > { %v560_v45 = vpop.f32.mrf.mxu2 }
  0xce   : > { %v710_v46 = vadd.f32 %v693_v39, %v638_v44  ;;  %v576_v24 = vadd.f32 %v560_v45, %v461_v14 }
  0xd2   : > { %v695_v55 = vpop.f32.mrf.mxu0 }
  0xd3   : > { %v623_v47 = vpop.f32.mrf.mxu3  ;;  %v1530_v49 = vpop.f32.mrf.mxu1 }
  0xd4   : > { %v639_v34 = vadd.f32 %v623_v47, %v576_v24 }
  0xd5   : > { %v563_v22 = vpop.f32.mrf.mxu2 }
  0xd6   : > { %v577_v42 = vadd.f32 %v563_v22, %v464_v43  ;;  %v711_v45 = vadd.f32 %v695_v55, %v639_v34 }
  0xda   : > { %v698_v50 = vpop.f32.mrf.mxu0 }
  0xdb   : > { %v626_v57 = vpop.f32.mrf.mxu3  ;;  %v1532_v20 = vpop.f32.mrf.mxu1 }
  0xdc   : > { %v640_v32 = vadd.f32 %v626_v57, %v577_v42 }
  0xdd   : > { %v1534_v51 = vpop.f32.mrf.mxu2 }
  0xde   : > { %v1536_v8 = vadd.f32 %v698_v50, %v640_v32  ;;  %v466_v32 = vadd.f32 %v1530_v49, %v1526_v18  ;;  %v469_v18 = vadd.f32 %v1532_v20, %v1523_v11 }
  0xe2   : > { %v1538_v52 = vpop.f32.mrf.mxu0 }
  0xe3   : > { %v1540_v53 = vpop.f32.mrf.mxu3  ;;  %v1542_v54 = vpop.f32.mrf.mxu1 }
  0xe5   : > { %v1544_v56 = vpop.f32.mrf.mxu2 }
  0xe6   : > { %v579_v14 = vadd.f32 %v1544_v56, %v469_v18 }
  0xea   : > { %v1546_v58 = vpop.f32.mrf.mxu0 }
  0xeb   : > { %v1548_v12 = vpop.f32.mrf.mxu3  ;;  %v755_v36 = vpop.f32.mrf.mxu1 }
  0xec   : > { %v775_v28 = vadd.f32 %v755_v36, %v708_v31  ;;  %v642_v24 = vadd.f32 %v1548_v12, %v579_v14 }
  0xed   : > { %v1550_v13 = vpop.f32.mrf.mxu2 }
  0xf2   : > { %v1552_v16 = vpop.f32.mrf.mxu0 }
  0xf3   : > { %v1554_v15 = vpop.f32.mrf.mxu3  ;;  %v757_v62 = vpop.f32.mrf.mxu1 }
  0xf4   : > { %v776_v61 = vadd.f32 %v757_v62, %v709_v48 }
  0xf5   : > { %v802_v2 = vpop.f32.mrf.mxu2 }
  0xf6   : > { %v822_v6 = vadd.f32 %v802_v2, %v775_v28  ;;  %v578_v2 = vadd.f32 %v1534_v51, %v466_v32 }
  0xfa   : > { %v917_v3 = vpop.f32.mrf.mxu0 }
  0xfb   : > { %v866_v5 = vpop.f32.mrf.mxu3  ;;  %v760_v9 = vpop.f32.mrf.mxu1 }
  0xfc   : > { %v886_v38 = vadd.f32 %v866_v5, %v822_v6  ;;  %v777_v31 = vadd.f32 %v760_v9, %v710_v46  ;;  %v641_v9 = vadd.f32 %v1540_v53, %v578_v2 }
  0xfd   : > { %v804_v10 = vpop.f32.mrf.mxu2 }
  0xfe   : > { %v823_v7 = vadd.f32 %v804_v10, %v776_v61  ;;  %v937_v17 = vadd.f32 %v917_v3, %v886_v38 }
 0x100   : > { %v949_v29 = vadd.f32 %v1560_v23, %v937_v17 }
 0x102   : > { %v919_v26 = vpop.f32.mrf.mxu0  ;;  %v986_v63 = vmul.f32 %v949_v29, %v949_v29 }
 0x103   : > { %v868_v33 = vpop.f32.mrf.mxu3  ;;  %v762_v21 = vpop.f32.mrf.mxu1 }
 0x104   : > { %v887_v27 = vadd.f32 %v868_v33, %v823_v7  ;;  %v778_v42 = vadd.f32 %v762_v21, %v711_v45 }
 0x105   : > { %v807_v25 = vpop.f32.mrf.mxu2 }
 0x106   : > { %v938_v30 = vadd.f32 %v919_v26, %v887_v27  ;;  %v824_v35 = vadd.f32 %v807_v25, %v777_v31  ;;  %v471_v25 = vadd.f32 %v1542_v54, %v1528_v0 }
 0x108   : > { %v950_v4 = vadd.f32 %v1560_v23, %v938_v30  ;;  %v580_v34 = vadd.f32 %v1550_v13, %v471_v25 }
 0x10a   : > { %v1157_v19 = vpack.c.bf16 %v950_v4, %v949_v29  ;;  %v973_v37 = vadd.f32 %v950_v4, %v949_v29  ;;  %v987_v39 = vmul.f32 %v950_v4, %v950_v4  ;;  %v922_v40 = vpop.f32.mrf.mxu0 }
 0x10b   : > { %v871_v41 = vpop.f32.mrf.mxu3  ;;  %v765_v46 = vpop.f32.mrf.mxu1 }
 0x10c   : > { %1158 = vst [vmem:[%s1568_s20] sm:$0xff] %v1157_v19   ;;  %v994_v44 = vadd.f32 %v987_v39, %v986_v63  ;;  %v888_v43 = vadd.f32 %v871_v41, %v824_v35  ;;  %v779_v6 = vadd.f32 %v765_v46, %v1536_v8  ;;  %v713_v8 = vadd.f32 %v1538_v52, %v641_v9 }
 0x10d   : > { %v809_v47 = vpop.f32.mrf.mxu2  ;;  %v714_v35 = vadd.f32 %v1546_v58, %v642_v24 }
 0x10e   : > { %v939_v22 = vadd.f32 %v922_v40, %v888_v43  ;;  %v825_v57 = vadd.f32 %v809_v47, %v778_v42 }
 0x110   : > { %v951_v50 = vadd.f32 %v1560_v23, %v939_v22 }
 0x112   : > { %v974_v36 = vadd.f32 %v973_v37, %v951_v50  ;;  %v988_v60 = vmul.f32 %v951_v50, %v951_v50  ;;  %v924_v62 = vpop.f32.mrf.mxu0  ;;  %v643_v37 = vadd.f32 %v1554_v15, %v580_v34 }
 0x113   : > { %v873_v1 = vpop.f32.mrf.mxu3  ;;  %v767_v5 = vpop.f32.mrf.mxu1 }
 0x114   : > { %v995_v59 = vadd.f32 %v994_v44, %v988_v60  ;;  %v889_v28 = vadd.f32 %v873_v1, %v825_v57  ;;  %v780_v21 = vadd.f32 %v767_v5, %v713_v8  ;;  %v715_v47 = vadd.f32 %v1552_v16, %v643_v37 }
 0x115   : > { %v812_v55 = vpop.f32.mrf.mxu2 }
 0x116   : > { %v940_v3 = vadd.f32 %v924_v62, %v889_v28  ;;  %v826_v10 = vadd.f32 %v812_v55, %v779_v6 }
 0x118   : > { %v952_v48 = vadd.f32 %v1560_v23, %v940_v3 }
 0x11a   : > { %v1162_v49 = vpack.c.bf16 %v952_v48, %v951_v50  ;;  %v975_v38 = vadd.f32 %v974_v36, %v952_v48  ;;  %v989_v61 = vmul.f32 %v952_v48, %v952_v48  ;;  %v927_v51 = vpop.f32.mrf.mxu0 }
 0x11b   : > { %v876_v7 = vpop.f32.mrf.mxu3  ;;  %v770_v20 = vpop.f32.mrf.mxu1 }
 0x11c   : > { %1174 = vst [vmem:[%s1568_s20 + $0x8] sm:$0xff] %v1162_v49   ;;  %v996_v17 = vadd.f32 %v995_v59, %v989_v61  ;;  %v890_v26 = vadd.f32 %v876_v7, %v826_v10  ;;  %v781_v19 = vadd.f32 %v770_v20, %v714_v35 }
 0x11d   : > { %v814_v33 = vpop.f32.mrf.mxu2 }
 0x11e   : > { %v941_v53 = vadd.f32 %v927_v51, %v890_v26  ;;  %v827_v11 = vadd.f32 %v814_v33, %v780_v21 }
 0x120   : > { %v953_v27 = vadd.f32 %v1560_v23, %v941_v53 }
 0x122   : > { %v976_v29 = vadd.f32 %v975_v38, %v953_v27  ;;  %v990_v30 = vmul.f32 %v953_v27, %v953_v27  ;;  %v929_v56 = vpop.f32.mrf.mxu0 }
 0x123   : > { %v878_v31 = vpop.f32.mrf.mxu3  ;;  %v772_v44 = vpop.f32.mrf.mxu1 }
 0x124   : > { %v997_v52 = vadd.f32 %v996_v17, %v990_v30  ;;  %v891_v4 = vadd.f32 %v878_v31, %v827_v11  ;;  %v782_v42 = vadd.f32 %v772_v44, %v715_v47 }
 0x125   : > { %v817_v63 = vpop.f32.mrf.mxu2 }
 0x126   : > { %v942_v12 = vadd.f32 %v929_v56, %v891_v4  ;;  %v828_v40 = vadd.f32 %v817_v63, %v781_v19 }
 0x128   : > { %v954_v39 = vadd.f32 %v1560_v23, %v942_v12 }
 0x12a   : > { %v1167_v0 = vpack.c.bf16 %v954_v39, %v953_v27  ;;  %v977_v54 = vadd.f32 %v976_v29, %v954_v39  ;;  %v991_v41 = vmul.f32 %v954_v39, %v954_v39  ;;  %v932_v43 = vpop.f32.mrf.mxu0 }
 0x12b   : > { %v881_v45 = vpop.f32.mrf.mxu3 }
 0x12c   : > { %1175 = vst [vmem:[%s1568_s20 + $0x10] sm:$0xff] %v1167_v0   ;;  %v998_v13 = vadd.f32 %v997_v52, %v991_v41  ;;  %v892_v46 = vadd.f32 %v881_v45, %v828_v40 }
 0x12d   : > { %v819_v58 = vpop.f32.mrf.mxu2 }
 0x12e   : > { %v943_v22 = vadd.f32 %v932_v43, %v892_v46  ;;  %v829_v50 = vadd.f32 %v819_v58, %v782_v42 }
 0x130   : > { %v955_v15 = vadd.f32 %v1560_v23, %v943_v22 }
 0x132   : > { %v978_v57 = vadd.f32 %v977_v54, %v955_v15  ;;  %v992_v32 = vmul.f32 %v955_v15, %v955_v15  ;;  %v934_v1 = vpop.f32.mrf.mxu0 }
 0x133   : > { %v883_v36 = vpop.f32.mrf.mxu3 }
 0x134   : > { %v999_v60 = vadd.f32 %v998_v13, %v992_v32  ;;  %v893_v62 = vadd.f32 %v883_v36, %v829_v50 }
 0x136   : > { %v944_v2 = vadd.f32 %v934_v1, %v893_v62 }
 0x138   : > { %v956_v59 = vadd.f32 %v1560_v23, %v944_v2 }
 0x13a   : > { %v1172_v28 = vpack.c.bf16 %v956_v59, %v955_v15  ;;  %v979_v55 = vadd.f32 %v978_v57, %v956_v59  ;;  %v993_v16 = vmul.f32 %v956_v59, %v956_v59 }
 0x13c   : > { %1176 = vst [vmem:[%s1568_s20 + $0x18] sm:$0xff] %v1172_v28   ;;  %v980_v3 = vrot.slane %v979_v55, 4  ;;  %v1000_v6 = vadd.f32 %v999_v60, %v993_v16 }
 0x13e   : > { %v981_v5 = vadd.f32 %v980_v3, %v979_v55  ;;  %v1001_v9 = vrot.slane %v1000_v6, 4 }
 0x140   : > { %v982_v48 = vrot.slane %v981_v5, 2  ;;  %v1002_v10 = vadd.f32 %v1001_v9, %v1000_v6 }
 0x142   : > { %v983_v18 = vadd.f32 %v982_v48, %v981_v5  ;;  %v1003_v49 = vrot.slane %v1002_v10, 2 }
 0x144   : > { %v984_v38 = vrot.slane %v983_v18, 1  ;;  %v1004_v61 = vadd.f32 %v1003_v49, %v1002_v10 }
 0x146   : > { %v1005_v51 = vrot.slane %v1004_v61, 1  ;;  %v985_v23 = vadd.f32 %v984_v38, %v983_v18 }
 0x148   : > { %v1006_v7 = vadd.f32 %v1005_v51, %v1004_v61 }
 0x14a   : > { %v1008_v14 = vsel %vm1007_vm8, %v985_v23, %v1006_v7 }
 0x14b   : > { %1009 = vst [vmem:[%s208_s24] sm:$0x3] %v1008_v14 }
 0x14c PF: > { %s15_s15 = sadd.s32 1, %s1196_s15  }
 0x14d   : > { %p12_p4 = scmp.ge.s32.totalorder %s15_s15, 4  }
 0x14f   :  { %14 = sbr.rel (!%p12_p4) target bundleno = 1 (0x1), region = 74 }

// kernel: down_block_forward.7
= control target key start
LH: loop header
LB: loop body
LE: loop exit
PB: predicated region body
PF: predicated region fallthrough
CT: control target
= control target key end

     0   :  { %s352_s12 = smov 0   ;;  %s379_s0 = inlined_call_operand.vmem [shape: bf16[2,8,8,128], index: 0, kind: input, shape index: {}]   ;;  %s380_s1 = inlined_call_operand.vmem [shape: f32[1,128], index: 1, kind: input, shape index: {}]   ;;  %s381_s2 = inlined_call_operand.vmem [shape: f32[1,128], index: 2, kind: input, shape index: {}]   ;;  %s382_s3 = inlined_call_operand.vmem [shape: f32[2,8,8,128], index: 3, kind: output, shape index: {}]  }
   0x1 LB: > { %s282_s13 = sadd.s32 4294967295, %s330_s12   ;;  %p286_p0 = scmp.ge.s32.totalorder %s330_s12, 1  ;;  %s330_s12 = sphi %s352_s12, %s13_s12  }
   0x2   : > { %p137_p1 = scmp.lt.s32.totalorder %s330_s12, 3 }
   0x4   : > { %p138_p2 = pnand %p286_p0, %p137_p1 }
   0x5   : > { %p161_p3 = scmp.lt.s32.totalorder (!%p138_p2), %s282_s13, 1 }
   0x6   : > { %141 = sbr.rel (%p138_p2) target bundleno = 31 (0x1f), region = 32 }
   0xb   : > { %s384_s13 = smov (!%p161_p3, %s282_s13), 1  ;;  %v322_v0 = vld [vmem:[%s380_s1] ss:$0 sm:$0xff] }
   0xc   : > { %s293_s14 = sshll.u32 %s384_s13, 5  ;;  %v323_v5 = vld [vmem:[%s381_s2] ss:$0 sm:$0xff]  ;;  %s294_s22 = sshll.u32 %s384_s13, 6 }
   0xd   : > { %s165_s17 = scalar_lea.vmem %s379_s0, %s293_s14  ;;  %s170_s25 = scalar_lea.vmem %s382_s3, %s294_s22 }
   0xe   : > { %v296_v1 = vld [vmem:[%s165_s17] sm:$0xff]   ;;  %v311_v2 = vld [vmem:[%s165_s17 + $0x8] sm:$0xff]   ;;  %v312_v3 = vld [vmem:[%s165_s17 + $0x10] sm:$0xff]  }
   0xf   : > { %v297_v4 = vunpack.c.l.bf16 %v296_v1  ;;  %v298_v6 = vunpack.c.h.bf16 %v296_v1  ;;  %v301_v7 = vunpack.c.l.bf16 %v311_v2  ;;  %v302_v8 = vunpack.c.h.bf16 %v311_v2  ;;  %v313_v9 = vld [vmem:[%s165_s17 + $0x18] sm:$0xff]  }
  0x10   : > { %v305_v10 = vunpack.c.l.bf16 %v312_v3  ;;  %v306_v11 = vunpack.c.h.bf16 %v312_v3  ;;  %v309_v12 = vunpack.c.l.bf16 %v313_v9  ;;  %v310_v13 = vunpack.c.h.bf16 %v313_v9 }
  0x11   : > { %v192_v14 = vmul.f32 %v322_v0, %v297_v4  ;;  %v193_v15 = vmul.f32 %v322_v0, %v298_v6  ;;  %v194_v16 = vmul.f32 %v322_v0, %v301_v7  ;;  %v195_v17 = vmul.f32 %v322_v0, %v302_v8 }
  0x12   : > { %v196_v18 = vmul.f32 %v322_v0, %v305_v10  ;;  %v197_v19 = vmul.f32 %v322_v0, %v306_v11  ;;  %v198_v20 = vmul.f32 %v322_v0, %v309_v12  ;;  %v199_v21 = vmul.f32 %v322_v0, %v310_v13 }
  0x13   : > { %v203_v22 = vadd.f32 %v323_v5, %v192_v14  ;;  %v204_v23 = vadd.f32 %v323_v5, %v193_v15  ;;  %v205_v24 = vadd.f32 %v323_v5, %v194_v16  ;;  %v206_v25 = vadd.f32 %v323_v5, %v195_v17 }
  0x14   : > { %v207_v26 = vadd.f32 %v323_v5, %v196_v18  ;;  %v208_v27 = vadd.f32 %v323_v5, %v197_v19  ;;  %v209_v31 = vadd.f32 %v323_v5, %v198_v20  ;;  %v210_v33 = vadd.f32 %v323_v5, %v199_v21 }
  0x15   : > { %v211_v28 = vmax.f32 %v203_v22, 0.0  ;;  %v212_v29 = vmax.f32 %v204_v23, 0.0  ;;  %v213_v30 = vmax.f32 %v205_v24, 0.0  ;;  %v214_v32 = vmax.f32 %v206_v25, 0.0 }
  0x16   : > { %v215_v34 = vmax.f32 %v207_v26, 0.0  ;;  %v216_v35 = vmax.f32 %v208_v27, 0.0  ;;  %v217_v36 = vmax.f32 %v209_v31, 0.0  ;;  %v218_v37 = vmax.f32 %v210_v33, 0.0 }
  0x17   : > { %219 = vst [vmem:[%s170_s25] sm:$0xff] %v211_v28 }
  0x18   : > { %220 = vst [vmem:[%s170_s25 + $0x8] sm:$0xff] %v212_v29 }
  0x19   : > { %221 = vst [vmem:[%s170_s25 + $0x10] sm:$0xff] %v213_v30 }
  0x1a   : > { %222 = vst [vmem:[%s170_s25 + $0x18] sm:$0xff] %v214_v32 }
  0x1b   : > { %223 = vst [vmem:[%s170_s25 + $0x20] sm:$0xff] %v215_v34 }
  0x1c   : > { %224 = vst [vmem:[%s170_s25 + $0x28] sm:$0xff] %v216_v35 }
  0x1d   : > { %225 = vst [vmem:[%s170_s25 + $0x30] sm:$0xff] %v217_v36 }
  0x1e   : > { %226 = vst [vmem:[%s170_s25 + $0x38] sm:$0xff] %v218_v37 }
  0x1f PF: > { %s13_s12 = sadd.s32 1, %s330_s12  }
  0x20   : > { %p10_p4 = scmp.ge.s32.totalorder %s13_s12, 4  }
  0x22   :  { %12 = sbr.rel (!%p10_p4) target bundleno = 1 (0x1), region = 62 }

// kernel: down_block_forward.6
= control target key start
LH: loop header
LB: loop body
LE: loop exit
PB: predicated region body
PF: predicated region fallthrough
CT: control target
= control target key end

     0   :  { %s2027_s15 = smov 0   ;;  %s2602_s0 = inlined_call_operand.vmem [shape: bf16[2,10,10,128], index: 0, kind: input, shape index: {}]   ;;  %s2603_s1 = inlined_call_operand.vmem [shape: bf16[1152,128], index: 1, kind: input, shape index: {}]   ;;  %s2604_s2 = inlined_call_operand.vmem [shape: f32[1,128], index: 2, kind: input, shape index: {}]   ;;  %s2605_s3 = inlined_call_operand.vmem [shape: bf16[2,8,8,128], index: 3, kind: output, shape index: {0}]   ;;  %s2606_s4 = inlined_call_operand.vmem [shape: f32[2,1,2,128], index: 4, kind: output, shape index: {1}]  }
   0x1 LB: > { %s1563_s16 = sadd.s32 4294967295, %s2000_s15   ;;  %p1567_p0 = scmp.ge.s32.totalorder %s2000_s15, 1  ;;  %s2000_s15 = sphi %s2027_s15, %s15_s15  }
   0x2   : > { %p165_p1 = scmp.lt.s32.totalorder %s2000_s15, 3 }
   0x4   : > { %p166_p2 = pnand %p1567_p0, %p165_p1 }
   0x5   : > { %p195_p3 = scmp.lt.s32.totalorder (!%p166_p2), %s1563_s16, 1 }
   0x6   : > { %169 = sbr.rel (%p166_p2) target bundleno = 349 (0x15d), region = 32 }
   0xb   : > { %v1888_v0 = vld [vmem:[%s2603_s1 + $0x78] sm:$0xff]  ;;  %v1887_v2 = vld [vmem:[%s2603_s1 + $0x70] sm:$0xff]  ;;  %s2612_s16 = smov (!%p195_p3, %s1563_s16), 1  ;;  %v1886_v5 = vld [vmem:[%s2603_s1 + $0x68] sm:$0xff]  ;;  %vm245_vm0 = vsmask.f32 3328 }
   0xc   : > { %v1896_v1 = vld [vmem:[%s2603_s1 + $0xb8] sm:$0xff]  ;;  %1968 = vmatpush.bf16.msra.mxu1 %v1888_v0  ;;  %440 = vmatpush.bf16.msra.mxu0 %v1888_v0  ;;  %v1895_v3 = vld [vmem:[%s2603_s1 + $0xb0] sm:$0xff]  ;;  %s1984_s27 = smul.u32 80, %s2612_s16  ;;  %v1894_v7 = vld [vmem:[%s2603_s1 + $0xa8] sm:$0xff]  ;;  %vm246_vm1 = vsmask.f32 7440 }
   0xd   : > { %693 = vmatpush.bf16.msra.mxu2 %v1896_v1  ;;  %v1904_v4 = vld [vmem:[%s2603_s1 + $0xf8] sm:$0xff]  ;;  %v1903_v6 = vld [vmem:[%s2603_s1 + $0xf0] sm:$0xff]  ;;  %vm578_vm2 = vcmask 1042432   ;;  %v1885_v11 = vld [vmem:[%s2603_s1 + $0x60] sm:$0xff]  ;;  %vm579_vm3 = vcmask 1046532   ;;  %s1571_s5 = sshll.u32 %s2612_s16, 1 }
   0xe   : > { %804 = vmatpush.bf16.msra.mxu3 %v1904_v4  ;;  %s2065_s10 = scalar_lea.vmem %s2602_s0, %s1984_s27  ;;  %v1893_v17 = vld [vmem:[%s2603_s1 + $0xa0] sm:$0xff]  ;;  %v1902_v18 = vld [vmem:[%s2603_s1 + $0xe8] sm:$0xff]  ;;  %v1884_v39 = vld [vmem:[%s2603_s1 + $0x58] sm:$0xff]  ;;  %s1872_s27 = sshll.u32 %s2612_s16, 5  ;;  %vm1474_vm6 = vcmask 1040384  }
   0xf   : > { %v2068_v8 = vld [vmem:[%s2065_s10 + $0x20] sm:$0xf]  ;;  %v2071_v9 = vld [vmem:[%s2065_s10 + $0x24] sm:$0x1]  ;;  %v2074_v10 = vld [vmem:[%s2065_s10 + $0x28] sm:$0xf]  ;;  %s2572_s30 = scalar_lea.vmem %s2605_s3, %s1872_s27  ;;  %s208_s8 = scalar_lea.vmem %s2606_s4, %s1571_s5 }
  0x10   : > { %1969 = vmatpush.bf16.msra.mxu1 %v1887_v2  ;;  %441 = vmatpush.bf16.msra.mxu0 %v1887_v2  ;;  %v2080_v12 = vld [vmem:[%s2065_s10 + $0x2c] sm:$0x1]  ;;  %v305_v13 = vshrl.u32 %v2068_v8, 16  ;;  %v308_v14 = vshll.u32 %v2068_v8, 16  ;;  %v314_v15 = vshll.u32 %v2071_v9, 16  ;;  %v319_v16 = vshrl.u32 %v2074_v10, 16  ;;  %vm2117_vm4 = vmor %vm245_vm0, %vm246_vm1 }
  0x11   : > { %694 = vmatpush.bf16.msra.mxu2 %v1895_v3  ;;  %v322_v19 = vshll.u32 %v2074_v10, 16  ;;  %v2094_v20 = vld [vmem:[%s2065_s10] sm:$0xf]  ;;  %v328_v24 = vshll.u32 %v2080_v12, 16  ;;  %v210_v25 = vld [vmem:[%s2065_s10 + $0x4] sm:$0x1]  ;;  %vm2123_vm5 = vmor %vm578_vm2, %vm579_vm3 }
  0x12   : > { %805 = vmatpush.bf16.msra.mxu3 %v1903_v6  ;;  %v307_v21 = vrot.slane %v305_v13, 4  ;;  %v310_v22 = vrot.slane %v308_v14, 5  ;;  %v321_v23 = vrot.slane %v319_v16, 4  ;;  %v316_v26 = vrot.slane %v314_v15, 5  ;;  %v2099_v28 = vld [vmem:[%s2065_s10 + $0x8] sm:$0xf] }
  0x13   : > { %v324_v27 = vrot.slane %v322_v19, 5  ;;  %v212_v29 = vld [vmem:[%s2065_s10 + $0xc] sm:$0x1]  ;;  %v249_v31 = vshrl.u32 %v2094_v20, 16  ;;  %v252_v32 = vshll.u32 %v2094_v20, 16  ;;  %v258_v33 = vshll.u32 %v210_v25, 16 }
  0x14   : > { %1970 = vmatpush.bf16.msra.mxu1 %v1886_v5  ;;  %442 = vmatpush.bf16.msra.mxu0 %v1886_v5  ;;  %v311_v30 = vor.u32 %v310_v22, %v307_v21  ;;  %v1901_v35 = vld [vmem:[%s2603_s1 + $0xe0] sm:$0xff]  ;;  %v263_v36 = vshrl.u32 %v2099_v28, 16  ;;  %v266_v37 = vshll.u32 %v2099_v28, 16  ;;  %v272_v38 = vshll.u32 %v212_v29, 16  ;;  %v1892_v44 = vld [vmem:[%s2603_s1 + $0x98] sm:$0xff]  ;;  %v1883_v59 = vld [vmem:[%s2603_s1 + $0x50] sm:$0xff] }
  0x15   : > { %695 = vmatpush.bf16.msra.mxu2 %v1894_v7  ;;  %v325_v34 = vor.u32 %v324_v27, %v321_v23  ;;  %v330_v41 = vrot.slane %v328_v24, 5  ;;  %v251_v42 = vrot.slane %v249_v31, 4  ;;  %v254_v43 = vrot.slane %v252_v32, 5  ;;  %v1900_v56 = vld [vmem:[%s2603_s1 + $0xd8] sm:$0xff]  ;;  %v2133_v58 = vld [vmem:[%s2065_s10 + $0x30] sm:$0xf] }
  0x16   : > { %806 = vmatpush.bf16.msra.mxu3 %v1902_v18  ;;  %v312_v40 = vrot.slane %v311_v30, 4  ;;  %v265_v47 = vrot.slane %v263_v36, 4  ;;  %v268_v48 = vrot.slane %v266_v37, 5  ;;  %v260_v50 = vrot.slane %v258_v33, 5  ;;  %v1891_v0 = vld [vmem:[%s2603_s1 + $0x90] sm:$0xff]  ;;  %v1890_v18 = vld [vmem:[%s2603_s1 + $0x88] sm:$0xff] }
  0x17   : > { %v326_v46 = vrot.slane %v325_v34, 4  ;;  %v255_v49 = vor.u32 %v254_v43, %v251_v42  ;;  %v1636_v52 = vrot.slane %v2094_v20, 9  ;;  %v583_v53 = vrot.slane %v210_v25, 5  ;;  %v2148_v3 = vld [vmem:[%s2065_s10 + $0x38] sm:$0xf]  ;;  %v1899_v16 = vld [vmem:[%s2603_s1 + $0xd0] sm:$0xff] }
  0x18   : > { %1971 = vmatpush.bf16.msra.mxu1 %v1885_v11  ;;  %443 = vmatpush.bf16.msra.mxu0 %v1885_v11  ;;  %v269_v54 = vor.u32 %v268_v48, %v265_v47  ;;  %v274_v55 = vrot.slane %v272_v38, 5  ;;  %v1637_v57 = vrot.slane %v2099_v28, 9  ;;  %v317_v60 = vsel %vm2117_vm4, %v312_v40, %v316_v26  ;;  %v2159_v11 = vld [vmem:[%s2065_s10 + $0x10] sm:$0xf]  ;;  %v2183_v25 = vld [vmem:[%s2065_s10 + $0x34] sm:$0x1] }
  0x19   : > { %696 = vmatpush.bf16.msra.mxu2 %v1893_v17  ;;  %v331_v61 = vsel %vm2117_vm4, %v326_v46, %v330_v41  ;;  %v256_v62 = vrot.slane %v255_v49, 4  ;;  %v587_v63 = vrot.slane %v212_v29, 5  ;;  %v584_v2 = vsel %vm2123_vm5, %v1636_v52, %v583_v53  ;;  %v1882_v17 = vld [vmem:[%s2603_s1 + $0x48] sm:$0xff]  ;;  %v2187_v27 = vld [vmem:[%s2065_s10 + $0x18] sm:$0xf]  ;;  %v1881_v34 = vld [vmem:[%s2603_s1 + $0x40] sm:$0xff] }
  0x1a   : > { %807 = vmatpush.bf16.msra.mxu3 %v1901_v35  ;;  %v270_v1 = vrot.slane %v269_v54, 4  ;;  %v333_v6 = vshrl.u32 %v2133_v58, 16  ;;  %v336_v7 = vshll.u32 %v2133_v58, 16  ;;  %v2161_v13 = vunpack.c.l.b16 %v317_v60  ;;  %v2191_v30 = vld [vmem:[%s2065_s10 + $0x3c] sm:$0x1]  ;;  %v1898_v36 = vld [vmem:[%s2603_s1 + $0xc8] sm:$0xff] }
  0x1b   : > { %v261_v4 = vsel %vm2117_vm4, %v256_v62, %v260_v50  ;;  %v2154_v5 = vsel %vm2123_vm5, %v1637_v57, %v587_v63  ;;  %v2163_v14 = vunpack.c.l.b16 %v331_v61  ;;  %v629_v21 = vunpack.c.l.b16 %v584_v2  ;;  %v2206_v40 = vld [vmem:[%s2065_s10 + $0x1c] sm:$0x1]  ;;  %v1889_v47 = vld [vmem:[%s2603_s1 + $0x80] sm:$0xff] }
  0x1c   : > { %1972 = vmatpush.bf16.msra.mxu1 %v1884_v39  ;;  %444 = vmatpush.bf16.msra.mxu0 %v1884_v39  ;;  %v275_v15 = vsel %vm2117_vm4, %v270_v1, %v274_v55  ;;  %v2176_v19 = vunpack.c.l.b16 %v261_v4  ;;  %v347_v22 = vshrl.u32 %v2148_v3, 16  ;;  %v630_v24 = vunpack.c.l.b16 %v2154_v5  ;;  %v214_v39 = vld [vmem:[%s2065_s10 + $0x14] sm:$0x1]  ;;  %v1880_v46 = vld [vmem:[%s2603_s1 + $0x38] sm:$0xff] }
  0x1d   : > { %697 = vmatpush.bf16.msra.mxu2 %v1892_v44  ;;  %v2179_v23 = vunpack.c.l.b16 %v275_v15  ;;  %v350_v26 = vshll.u32 %v2148_v3, 16  ;;  %v277_v29 = vshrl.u32 %v2159_v11, 16  ;;  %v335_v31 = vrot.slane %v333_v6, 4  ;;  %v1912_v53 = vld [vmem:[%s2603_s1 + $0x138] sm:$0xff] }
  0x1e   : > { %808 = vmatpush.bf16.msra.mxu3 %v1900_v56  ;;  %v338_v32 = vrot.slane %v336_v7, 5  ;;  %v280_v33 = vshll.u32 %v2159_v11, 16  ;;  %v2199_v35 = vpack.c.b16 %v2163_v14, %v2161_v13  ;;  %v349_v37 = vrot.slane %v347_v22, 4  ;;  %v1928_v55 = vld [vmem:[%s2603_s1 + $0x1b8] sm:$0xff]  ;;  %v1879_v7 = vld [vmem:[%s2603_s1 + $0x30] sm:$0xff] }
  0x1f   : > { %v352_v38 = vrot.slane %v350_v26, 5  ;;  %v279_v41 = vrot.slane %v277_v29, 4  ;;  %v291_v43 = vshrl.u32 %v2187_v27, 16  ;;  %v294_v44 = vshll.u32 %v2187_v27, 16  ;;  %v1936_v15 = vld [vmem:[%s2603_s1 + $0x1f8] sm:$0xff] }
  0x20   : > { %1973 = vmatpush.bf16.msra.mxu1 %v1883_v59  ;;  %445 = vmatpush.bf16.msra.mxu0 %v1883_v59  ;;  %v282_v42 = vrot.slane %v280_v33, 5  ;;  %v384_v48 = vpack.c.b16 %v2179_v23, %v2176_v19  ;;  %v637_v49 = vpack.c.b16 %v630_v24, %v629_v21  ;;  %v342_v50 = vshll.u32 %v2183_v25, 16  ;;  %v1927_v21 = vld [vmem:[%s2603_s1 + $0x1b0] sm:$0xff] }
  0x21   : > { %698 = vmatpush.bf16.msra.mxu2 %v1891_v0  ;;  %v356_v52 = vshll.u32 %v2191_v30, 16  ;;  %v339_v54 = vor.u32 %v338_v32, %v335_v31  ;;  %v286_v56 = vshll.u32 %v214_v39, 16  ;;  %v293_v57 = vrot.slane %v291_v43, 4  ;;  %v1897_v0 = vld [vmem:[%s2603_s1 + $0xc0] sm:$0xff]  ;;  %v1910_v43 = vld [vmem:[%s2603_s1 + $0x128] sm:$0xff] }
  0x22   : > { %809 = vmatpush.bf16.msra.mxu3 %v1899_v16  ;;  %v296_v59 = vrot.slane %v294_v44, 5  ;;  %v353_v60 = vor.u32 %v352_v38, %v349_v37  ;;  %v300_v61 = vshll.u32 %v2206_v40, 16  ;;  %v478_v62 = vunpack.c.l.b16 %v2099_v28  ;;  %v1911_v16 = vld [vmem:[%s2603_s1 + $0x130] sm:$0xff]  ;;  %v1878_v37 = vld [vmem:[%s2603_s1 + $0x28] sm:$0xff] }
  0x23   : > { %v479_v63 = vunpack.c.l.b16 %v2159_v11  ;;  %v283_v1 = vor.u32 %v282_v42, %v279_v41  ;;  %v1638_v4 = vrot.slane %v2159_v11, 9  ;;  %v591_v6 = vrot.slane %v214_v39, 5  ;;  %v1935_v42 = vld [vmem:[%s2603_s1 + $0x1f0] sm:$0xff]  ;;  %v1926_v44 = vld [vmem:[%s2603_s1 + $0x1a8] sm:$0xff] }
  0x24   : > { %1974 = vmatpush.bf16.msra.mxu1 %v1882_v17  ;;  %446 = vmatpush.bf16.msra.mxu0 %v1882_v17  ;;  %v297_v2 = vor.u32 %v296_v59, %v293_v57  ;;  %v344_v17 = vrot.slane %v342_v50, 5  ;;  %v340_v22 = vrot.slane %v339_v54, 4  ;;  %v288_v26 = vrot.slane %v286_v56, 5  ;;  %v1909_v50 = vld [vmem:[%s2603_s1 + $0x120] sm:$0xff]  ;;  %v1876_v59 = vld [vmem:[%s2603_s1 + $0x18] sm:$0xff]  ;;  %v1918_v28 = vld [vmem:[%s2603_s1 + $0x168] sm:$0xff] }
  0x25   : > { %699 = vmatpush.bf16.msra.mxu2 %v1890_v18  ;;  %v358_v18 = vrot.slane %v356_v52, 5  ;;  %v592_v19 = vsel %vm2123_vm5, %v1638_v4, %v591_v6  ;;  %v748_v29 = vpack.c.b16 %v479_v63, %v478_v62  ;;  %v354_v32 = vrot.slane %v353_v60, 4  ;;  %v1925_v52 = vld [vmem:[%s2603_s1 + $0x1a0] sm:$0xff]  ;;  %v1908_v60 = vld [vmem:[%s2603_s1 + $0x118] sm:$0xff]  ;;  %v1875_v6 = vld [vmem:[%s2603_s1 + $0x10] sm:$0xff] }
  0x26   : > { %810 = vmatpush.bf16.msra.mxu3 %v1898_v36  ;;  %v631_v31 = vunpack.c.l.b16 %v592_v19  ;;  %v284_v33 = vrot.slane %v283_v1, 4  ;;  %v302_v36 = vrot.slane %v300_v61, 5  ;;  %v1639_v38 = vrot.slane %v2187_v27, 9 }
  0x27   : > { %v595_v39 = vrot.slane %v2206_v40, 5  ;;  %v345_v5 = vsel %vm2117_vm4, %v340_v22, %v344_v17  ;;  %v480_v1 = vunpack.c.l.b16 %v2187_v27  ;;  %v1933_v17 = vld [vmem:[%s2603_s1 + $0x1e0] sm:$0xff]  ;;  %v1640_v19 = vrot.slane %v2068_v8, 9 }
  0x28   : > { %1975 = vmatpush.bf16.msra.mxu1 %v1881_v34  ;;  %447 = vmatpush.bf16.msra.mxu0 %v1881_v34  ;;  %v298_v34 = vrot.slane %v297_v2, 4  ;;  %v2261_v41 = vpack.c.b16 %v631_v31, %v630_v24  ;;  %v359_v24 = vsel %vm2117_vm4, %v354_v32, %v358_v18  ;;  %v289_v40 = vsel %vm2117_vm4, %v284_v33, %v288_v26  ;;  %v1874_v18 = vld [vmem:[%s2603_s1 + $0x8] sm:$0xff]  ;;  %v1932_v32 = vld [vmem:[%s2603_s1 + $0x1d8] sm:$0xff]  ;;  %v1929_v27 = vld [vmem:[%s2603_s1 + $0x1c0] sm:$0xff] }
  0x29   : > { %700 = vmatpush.bf16.msra.mxu2 %v1889_v47  ;;  %v1877_v47 = vld [vmem:[%s2603_s1 + $0x20] sm:$0xff]  ;;  %v2298_v54 = vunpack.c.l.b16 %v359_v24  ;;  %v481_v2 = vunpack.c.l.b16 %v2068_v8  ;;  %v1641_v22 = vrot.slane %v2074_v10, 9  ;;  %v603_v26 = vrot.slane %v2080_v12, 5 }
  0x2a   : > { %811 = vmatpush.bf16.msra.mxu3 %v1897_v0  ;;  %v483_v24 = vunpack.c.l.b16 %v2133_v58 }
  0x2b   : > { %458 = vmatmul.bf16.vlgmr.msra.gmra.mxu1 %v2199_v35  ;;  %448 = vmatmul.bf16.vlgmr.msra.gmra.mxu0 %v384_v48  ;;  %v2285_v48 = vsel %vm2123_vm5, %v1639_v38, %v595_v39  ;;  %v2369_v33 = vsel %vm2123_vm5, %v1641_v22, %v603_v26  ;;  %v1944_v38 = vld [vmem:[%s2603_s1 + $0x238] sm:$0xff]  ;;  %v486_v22 = vpack.c.b16 %v480_v1, %v479_v63  ;;  %v1939_v63 = vld [vmem:[%s2603_s1 + $0x210] sm:$0xff] }
  0x2c   : > { %541 = vmatpush.bf16.msrb.mxu1 %v1880_v46  ;;  %928 = vmatpush.bf16.msrb.mxu0 %v1912_v53  ;;  %v303_v46 = vsel %vm2117_vm4, %v298_v34, %v302_v36  ;;  %v2296_v53 = vunpack.c.l.b16 %v345_v5  ;;  %v632_v57 = vunpack.c.l.b16 %v2285_v48  ;;  %v1920_v34 = vld [vmem:[%s2603_s1 + $0x178] sm:$0xff]  ;;  %v1905_v36 = vld [vmem:[%s2603_s1 + $0x100] sm:$0xff]  ;;  %v482_v5 = vunpack.c.l.b16 %v2074_v10  ;;  %v227_v48 = vld [vmem:[%s2065_s10 + $0x48] sm:$0xf] }
  0x2d   : > { %1148 = vmatpush.bf16.msrb.mxu2 %v1928_v55  ;;  %812 = vmatmul.bf16.vlgmr.msra.gmra.mxu3 %v748_v29  ;;  %v2300_v55 = vunpack.c.l.b16 %v289_v40  ;;  %v2302_v56 = vunpack.c.l.b16 %v303_v46  ;;  %v1923_v29 = vld [vmem:[%s2603_s1 + $0x190] sm:$0xff] }
  0x2e   : > { %701 = vmatmul.bf16.vlgmr.msra.gmra.mxu2 %v637_v49  ;;  %1266 = vmatpush.bf16.msrb.mxu3 %v1936_v15  ;;  %v1934_v49 = vld [vmem:[%s2603_s1 + $0x1e8] sm:$0xff]  ;;  %v2313_v61 = vpack.c.b16 %v2298_v54, %v2296_v53  ;;  %v2323_v4 = vpack.c.b16 %v632_v57, %v631_v31  ;;  %v749_v15 = vpack.c.b16 %v481_v2, %v480_v1  ;;  %v1943_v46 = vld [vmem:[%s2603_s1 + $0x230] sm:$0xff] }
  0x2f   : > { %v2317_v0 = vpack.c.b16 %v2302_v56, %v2300_v55  ;;  %v1906_v31 = vld [vmem:[%s2603_s1 + $0x108] sm:$0xff]  ;;  %v873_v26 = vpack.c.b16 %v2161_v13, %v2302_v56  ;;  %v1913_v56 = vld [vmem:[%s2603_s1 + $0x140] sm:$0xff] }
  0x30   : > { %542 = vmatpush.bf16.msrb.mxu1 %v1879_v7  ;;  %929 = vmatpush.bf16.msrb.mxu0 %v1911_v16  ;;  %v1907_v7 = vld [vmem:[%s2603_s1 + $0x110] sm:$0xff]  ;;  %v1924_v16 = vld [vmem:[%s2603_s1 + $0x198] sm:$0xff]  ;;  %v1914_v13 = vld [vmem:[%s2603_s1 + $0x148] sm:$0xff] }
  0x31   : > { %1149 = vmatpush.bf16.msrb.mxu2 %v1927_v21  ;;  %v599_v21 = vrot.slane %v2071_v9, 5  ;;  %v1873_v9 = vld [vmem:[%s2603_s1] sm:$0xff] }
  0x32   : > { %1267 = vmatpush.bf16.msrb.mxu3 %v1935_v42  ;;  %v634_v42 = vunpack.c.l.b16 %v2369_v33 }
  0x33   : > { %v2365_v12 = vsel %vm2123_vm5, %v1640_v19, %v599_v21  ;;  %v2448_v19 = vld [vmem:[%s2065_s10 + $0x40] sm:$0xf]  ;;  %v1915_v21 = vld [vmem:[%s2603_s1 + $0x150] sm:$0xff] }
  0x34   : > { %543 = vmatpush.bf16.msrb.mxu1 %v1878_v37  ;;  %930 = vmatpush.bf16.msrb.mxu0 %v1910_v43  ;;  %v477_v37 = vunpack.c.l.b16 %v2094_v20  ;;  %v633_v39 = vunpack.c.l.b16 %v2365_v12  ;;  %v1919_v43 = vld [vmem:[%s2603_s1 + $0x170] sm:$0xff]  ;;  %v872_v20 = vpack.c.b16 %v2300_v55, %v2179_v23  ;;  %v1922_v23 = vld [vmem:[%s2603_s1 + $0x188] sm:$0xff]  ;;  %v1643_v55 = vrot.slane %v2148_v3, 9 }
  0x35   : > { %1150 = vmatpush.bf16.msrb.mxu2 %v1926_v44  ;;  %v842_v1 = vshrl.u32 %v2448_v19, 16  ;;  %v1189_v12 = vshll.u32 %v227_v48, 16 }
  0x36   : > { %1268 = vmatpush.bf16.msrb.mxu3 %v1934_v49  ;;  %v485_v44 = vpack.c.b16 %v478_v62, %v477_v37  ;;  %v2396_v40 = vpack.c.b16 %v634_v42, %v633_v39  ;;  %v750_v62 = vpack.c.b16 %v483_v24, %v482_v5  ;;  %v1931_v49 = vld [vmem:[%s2603_s1 + $0x1d0] sm:$0xff]  ;;  %v988_v8 = vpack.c.b16 %v633_v39, %v632_v57 }
  0x37   : > { %v1186_v57 = vshrl.u32 %v227_v48, 16 }
  0x38   : > { %544 = vmatpush.bf16.msrb.mxu1 %v1877_v47  ;;  %931 = vmatpush.bf16.msrb.mxu0 %v1909_v50  ;;  %v1942_v47 = vld [vmem:[%s2603_s1 + $0x228] sm:$0xff]  ;;  %v1642_v50 = vrot.slane %v2133_v58, 9 }
  0x39   : > { %1151 = vmatpush.bf16.msrb.mxu2 %v1925_v52  ;;  %v607_v52 = vrot.slane %v2183_v25, 5  ;;  %v1930_v25 = vld [vmem:[%s2603_s1 + $0x1c8] sm:$0xff]  ;;  %v1188_v39 = vrot.slane %v1186_v57, 4 }
  0x3a   : > { %1269 = vmatpush.bf16.msrb.mxu3 %v1933_v17 }
  0x3b   : > { %463 = vmatmul.bf16.gmra.mxu1 %v2313_v61  ;;  %453 = vmatmul.bf16.gmra.mxu0 %v2317_v0 }
  0x3c   : > { %545 = vmatpush.bf16.msrb.mxu1 %v1876_v59  ;;  %932 = vmatpush.bf16.msrb.mxu0 %v1908_v60  ;;  %v611_v59 = vrot.slane %v2191_v30, 5  ;;  %v1921_v60 = vld [vmem:[%s2603_s1 + $0x180] sm:$0xff] }
  0x3d   : > { %1152 = vmatpush.bf16.msrb.mxu2 %v1924_v16  ;;  %817 = vmatmul.bf16.gmra.mxu3 %v749_v15  ;;  %v1941_v30 = vld [vmem:[%s2603_s1 + $0x220] sm:$0xff]  ;;  %v1916_v16 = vld [vmem:[%s2603_s1 + $0x158] sm:$0xff] }
  0x3e   : > { %706 = vmatmul.bf16.gmra.mxu2 %v2323_v4  ;;  %1270 = vmatpush.bf16.msrb.mxu3 %v1932_v32  ;;  %v2440_v15 = vsel %vm2123_vm5, %v1643_v55, %v611_v59  ;;  %v1837_v59 = vrot.slane %v227_v48, 9 }
  0x40   : > { %546 = vmatpush.bf16.msrb.mxu1 %v1875_v6  ;;  %933 = vmatpush.bf16.msrb.mxu0 %v1907_v7  ;;  %v1917_v6 = vld [vmem:[%s2603_s1 + $0x160] sm:$0xff]  ;;  %v2436_v7 = vsel %vm2123_vm5, %v1642_v50, %v607_v52 }
  0x41   : > { %1153 = vmatpush.bf16.msrb.mxu2 %v1923_v29  ;;  %v635_v17 = vunpack.c.l.b16 %v2436_v7  ;;  %v484_v29 = vunpack.c.l.b16 %v2148_v3  ;;  %v1940_v3 = vld [vmem:[%s2603_s1 + $0x218] sm:$0xff] }
  0x42   : > { %1271 = vmatpush.bf16.msrb.mxu3 %v1931_v49  ;;  %v1097_v49 = vunpack.c.l.b16 %v227_v48 }
  0x44   : > { %547 = vmatpush.bf16.msrb.mxu1 %v1874_v18  ;;  %934 = vmatpush.bf16.msrb.mxu0 %v1906_v31  ;;  %v636_v18 = vunpack.c.l.b16 %v2440_v15  ;;  %v747_v31 = vunpack.c.l.b16 %v2448_v19 }
  0x45   : > { %1154 = vmatpush.bf16.msrb.mxu2 %v1922_v23 }
  0x46   : > { %1272 = vmatpush.bf16.msrb.mxu3 %v1930_v25  ;;  %v2465_v32 = vpack.c.b16 %v636_v18, %v635_v17  ;;  %v751_v11 = vpack.c.b16 %v747_v31, %v484_v29  ;;  %v1098_v52 = vpack.c.b16 %v1097_v49, %v747_v31 }
  0x48   : > { %548 = vmatpush.bf16.msrb.mxu1 %v1873_v9  ;;  %935 = vmatpush.bf16.msrb.mxu0 %v1905_v36  ;;  %v845_v9 = vshll.u32 %v2448_v19, 16  ;;  %v844_v36 = vrot.slane %v842_v1, 4 }
  0x49   : > { %1155 = vmatpush.bf16.msrb.mxu2 %v1921_v60 }
  0x4a   : > { %1273 = vmatpush.bf16.msrb.mxu3 %v1929_v27  ;;  %v847_v37 = vrot.slane %v845_v9, 5 }
  0x4b   : > { %549 = vmatmul.bf16.vlgmr.msrb.gmra.mxu1 %v485_v44  ;;  %936 = vmatmul.bf16.vlgmr.msrb.gmra.mxu0 %v872_v20  ;;  %v874_v44 = vpack.c.b16 %v2296_v53, %v2163_v14  ;;  %v488_v53 = vpack.c.b16 %v484_v29, %v483_v24 }
  0x4c   : > { %1043 = vmatpush.bf16.msra.mxu1 %v1920_v34  ;;  %1375 = vmatpush.bf16.msra.mxu0 %v1944_v38  ;;  %v1938_v34 = vld [vmem:[%s2603_s1 + $0x208] sm:$0xff]  ;;  %v848_v20 = vor.u32 %v847_v37, %v844_v36 }
  0x4d   : > { %822 = vmatmul.bf16.gmra.mxu3 %v750_v62  ;;  %1976 = vmatpush.bf16.msra.mxu2 %v1944_v38  ;;  %v226_v38 = vld [vmem:[%s2065_s10 + $0x44] sm:$0x1] }
  0x4e   : > { %711 = vmatmul.bf16.gmra.mxu2 %v2396_v40  ;;  %v849_v23 = vrot.slane %v848_v20, 4  ;;  %v968_v55 = vrot.slane %v226_v38, 5 }
  0x50   : > { %1044 = vmatpush.bf16.msra.mxu1 %v1919_v43  ;;  %1376 = vmatpush.bf16.msra.mxu0 %v1943_v46  ;;  %v487_v43 = vpack.c.b16 %v482_v5, %v481_v2  ;;  %v228_v5 = vld [vmem:[%s2065_s10 + $0x4c] sm:$0x1] }
  0x51   : > { %1977 = vmatpush.bf16.msra.mxu2 %v1943_v46  ;;  %v851_v46 = vshll.u32 %v226_v38, 16  ;;  %v1195_v24 = vshll.u32 %v228_v5, 16 }
  0x53   : > { %v853_v62 = vrot.slane %v851_v46, 5 }
  0x54   : > { %1045 = vmatpush.bf16.msra.mxu1 %v1918_v28  ;;  %1377 = vmatpush.bf16.msra.mxu0 %v1942_v47  ;;  %v1937_v28 = vld [vmem:[%s2603_s1 + $0x200] sm:$0xff] }
  0x55   : > { %1978 = vmatpush.bf16.msra.mxu2 %v1942_v47  ;;  %v854_v10 = vsel %vm2117_vm4, %v849_v23, %v853_v62  ;;  %v1197_v47 = vrot.slane %v1195_v24, 5 }
  0x56   : > { %v871_v14 = vunpack.c.l.b16 %v854_v10 }
  0x58   : > { %1046 = vmatpush.bf16.msra.mxu1 %v1917_v6  ;;  %1378 = vmatpush.bf16.msra.mxu0 %v1941_v30  ;;  %v875_v2 = vpack.c.b16 %v871_v14, %v2298_v54 }
  0x59   : > { %1979 = vmatpush.bf16.msra.mxu2 %v1941_v30 }
  0x5b   : > { %554 = vmatmul.bf16.gmra.mxu1 %v486_v22  ;;  %941 = vmatmul.bf16.gmra.mxu0 %v873_v26 }
  0x5c   : > { %1047 = vmatpush.bf16.msra.mxu1 %v1916_v16  ;;  %1379 = vmatpush.bf16.msra.mxu0 %v1940_v3 }
  0x5d   : > { %827 = vmatmul.bf16.gmra.mxu3 %v751_v11  ;;  %1980 = vmatpush.bf16.msra.mxu2 %v1940_v3 }
  0x5e   : > { %716 = vmatmul.bf16.gmra.mxu2 %v2465_v32 }
  0x60   : > { %1048 = vmatpush.bf16.msra.mxu1 %v1915_v21  ;;  %1380 = vmatpush.bf16.msra.mxu0 %v1939_v63 }
  0x61   : > { %1981 = vmatpush.bf16.msra.mxu2 %v1939_v63 }
  0x64   : > { %1049 = vmatpush.bf16.msra.mxu1 %v1914_v13  ;;  %1381 = vmatpush.bf16.msra.mxu0 %v1938_v34 }
  0x65   : > { %1982 = vmatpush.bf16.msra.mxu2 %v1938_v34 }
  0x68   : > { %1050 = vmatpush.bf16.msra.mxu1 %v1913_v56  ;;  %1382 = vmatpush.bf16.msra.mxu0 %v1937_v28 }
  0x69   : > { %1983 = vmatpush.bf16.msra.mxu2 %v1937_v28 }
  0x6b   : > { %559 = vmatmul.bf16.gmra.mxu1 %v487_v43  ;;  %946 = vmatmul.bf16.gmra.mxu0 %v874_v44 }
  0x6d   : > { %1274 = vmatmul.bf16.vlgmr.msrb.gmra.mxu3 %v2317_v0  ;;  %v1191_v0 = vrot.slane %v1189_v12, 5 }
  0x6e   : > { %1156 = vmatmul.bf16.vlgmr.msrb.gmra.mxu2 %v486_v22 }
  0x6f   : > { %v1192_v58 = vor.u32 %v1191_v0, %v1188_v39 }
  0x71   : > { %v1193_v54 = vrot.slane %v1192_v58, 4 }
  0x7b   : > { %564 = vmatmul.bf16.gmra.mxu1 %v488_v53  ;;  %951 = vmatmul.bf16.gmra.mxu0 %v875_v2 }
  0x7d   : > { %1279 = vmatmul.bf16.gmra.mxu3 %v2199_v35  ;;  %v1198_v35 = vsel %vm2117_vm4, %v1193_v54, %v1197_v47 }
  0x7e   : > { %1161 = vmatmul.bf16.gmra.mxu2 %v487_v43  ;;  %v1215_v50 = vunpack.c.l.b16 %v1198_v35 }
  0x8b   : > { %1051 = vmatmul.bf16.vlgmr.msra.gmra.mxu1 %v2261_v41  ;;  %1383 = vmatmul.bf16.vlgmr.msra.gmra.mxu0 %v2323_v4  ;;  %v1216_v41 = vpack.c.b16 %v1215_v50, %v871_v14  ;;  %v1740_v4 = vrot.slane %v2448_v19, 9 }
  0x8d   : > { %1284 = vmatmul.bf16.gmra.mxu3 %v2313_v61  ;;  %v1306_v61 = vrot.slane %v228_v5, 5  ;;  %v969_v60 = vsel %vm2123_vm5, %v1740_v4, %v968_v55 }
  0x8e   : > { %1166 = vmatmul.bf16.gmra.mxu2 %v488_v53  ;;  %v986_v6 = vunpack.c.l.b16 %v969_v60 }
  0x8f   : > { %v1307_v45 = vsel %vm2123_vm5, %v1837_v59, %v1306_v61 }
  0x90   : > { %v1324_v25 = vunpack.c.l.b16 %v1307_v45  ;;  %v990_v51 = vpack.c.b16 %v986_v6, %v636_v18 }
  0x92   : > { %v1325_v19 = vpack.c.b16 %v1324_v25, %v986_v6 }
  0x9b   : > { %1056 = vmatmul.bf16.gmra.mxu1 %v988_v8  ;;  %1388 = vmatmul.bf16.gmra.mxu0 %v2396_v40  ;;  %v989_v40 = vpack.c.b16 %v635_v17, %v634_v42 }
  0x9d   : > { %1289 = vmatmul.bf16.gmra.mxu3 %v1216_v41 }
  0x9e   : > { %1171 = vmatmul.bf16.gmra.mxu2 %v1098_v52 }
  0xa8   : > { %v459_v30 = vpop.f32.mrf.mxu1  ;;  %v449_v16 = vpop.f32.mrf.mxu0 }
  0xab   : > { %1061 = vmatmul.bf16.gmra.mxu1 %v989_v40  ;;  %1393 = vmatmul.bf16.gmra.mxu0 %v2465_v32 }
  0xae   : > { %1398 = vmatmul.bf16.vlgmr.msra.gmra.mxu2 %v1325_v19 }
  0xb0   : > { %v461_v22 = vpop.f32.mrf.mxu1  ;;  %v451_v26 = vpop.f32.mrf.mxu0 }
  0xb1   : > { %v702_v21 = vpop.f32.mrf.mxu2  ;;  %v813_v29 = vpop.f32.mrf.mxu3 }
  0xb8   : > { %v464_v11 = vpop.f32.mrf.mxu1  ;;  %v454_v33 = vpop.f32.mrf.mxu0 }
  0xb9   : > { %v704_v31 = vpop.f32.mrf.mxu2  ;;  %v2533_v13 = vpop.f32.mrf.mxu3 }
  0xbb   : > { %1066 = vmatmul.bf16.gmra.mxu1 %v990_v51 }
  0xc0   : > { %v466_v7 = vpop.f32.mrf.mxu1  ;;  %v456_v17 = vpop.f32.mrf.mxu0 }
  0xc1   : > { %v707_v42 = vpop.f32.mrf.mxu2  ;;  %v818_v3 = vpop.f32.mrf.mxu3 }
  0xc8   : > { %v550_v32 = vpop.f32.mrf.mxu1  ;;  %v937_v63 = vpop.f32.mrf.mxu0 }
  0xc9   : > { %v709_v27 = vpop.f32.mrf.mxu2  ;;  %v551_v56 = vadd.f32 %v550_v32, %v449_v16  ;;  %v2535_v9 = vpop.f32.mrf.mxu3 }
  0xcb   : > { %v722_v1 = vadd.f32 %v702_v21, %v551_v56 }
  0xcd   : > { %v833_v34 = vadd.f32 %v813_v29, %v722_v1 }
  0xcf   : > { %v957_v15 = vadd.f32 %v937_v63, %v833_v34 }
  0xd0   : > { %v552_v36 = vpop.f32.mrf.mxu1  ;;  %v939_v37 = vpop.f32.mrf.mxu0 }
  0xd1   : > { %v712_v18 = vpop.f32.mrf.mxu2  ;;  %v553_v38 = vadd.f32 %v552_v36, %v451_v26  ;;  %v823_v44 = vpop.f32.mrf.mxu3 }
  0xd3   : > { %v723_v43 = vadd.f32 %v704_v31, %v553_v38 }
  0xd8   : > { %v555_v46 = vpop.f32.mrf.mxu1  ;;  %v942_v28 = vpop.f32.mrf.mxu0 }
  0xd9   : > { %v714_v20 = vpop.f32.mrf.mxu2  ;;  %v556_v23 = vadd.f32 %v555_v46, %v454_v33  ;;  %v2537_v53 = vpop.f32.mrf.mxu3  ;;  %v834_v33 = vadd.f32 %v2533_v13, %v723_v43 }
  0xdb   : > { %v724_v62 = vadd.f32 %v707_v42, %v556_v23 }
  0xdd   : > { %v835_v8 = vadd.f32 %v818_v3, %v724_v62 }
  0xdf   : > { %v959_v10 = vadd.f32 %v942_v28, %v835_v8 }
  0xe0   : > { %v557_v2 = vpop.f32.mrf.mxu1  ;;  %v2539_v48 = vpop.f32.mrf.mxu0 }
  0xe1   : > { %v717_v14 = vpop.f32.mrf.mxu2  ;;  %v558_v57 = vadd.f32 %v557_v2, %v456_v17  ;;  %v2541_v24 = vpop.f32.mrf.mxu3  ;;  %v958_v17 = vadd.f32 %v939_v37, %v834_v33 }
  0xe3   : > { %v725_v12 = vadd.f32 %v709_v27, %v558_v57 }
  0xe8   : > { %v560_v0 = vpop.f32.mrf.mxu1  ;;  %v947_v5 = vpop.f32.mrf.mxu0 }
  0xe9   : > { %v719_v39 = vpop.f32.mrf.mxu2  ;;  %v561_v58 = vadd.f32 %v560_v0, %v459_v30  ;;  %v2549_v55 = vpop.f32.mrf.mxu3 }
  0xeb   : > { %v726_v54 = vadd.f32 %v712_v18, %v561_v58 }
  0xed   : > { %v837_v47 = vadd.f32 %v823_v44, %v726_v54  ;;  %v836_v44 = vadd.f32 %v2535_v9, %v725_v12 }
  0xef   : > { %v2543_v49 = vadd.f32 %v947_v5, %v837_v47 }
  0xf0   : > { %v562_v50 = vpop.f32.mrf.mxu1  ;;  %v2545_v52 = vpop.f32.mrf.mxu0 }
  0xf1   : > { %v1157_v35 = vpop.f32.mrf.mxu2  ;;  %v563_v41 = vadd.f32 %v562_v50, %v461_v22  ;;  %v1275_v25 = vpop.f32.mrf.mxu3 }
  0xf3   : > { %v2547_v4 = vadd.f32 %v714_v20, %v563_v41 }
  0xf8   : > { %v565_v61 = vpop.f32.mrf.mxu1  ;;  %v2551_v60 = vpop.f32.mrf.mxu0 }
  0xf9   : > { %v1159_v59 = vpop.f32.mrf.mxu2  ;;  %v566_v45 = vadd.f32 %v565_v61, %v464_v11  ;;  %v1277_v22 = vpop.f32.mrf.mxu3 }
  0xfb   : > { %v2553_v6 = vadd.f32 %v717_v14, %v566_v45 }
 0x100   : > { %v567_v30 = vpop.f32.mrf.mxu1  ;;  %v2555_v16 = vpop.f32.mrf.mxu0 }
 0x101   : > { %v1162_v40 = vpop.f32.mrf.mxu2  ;;  %v568_v19 = vadd.f32 %v567_v30, %v466_v7  ;;  %v2563_v7 = vld [vmem:[%s2604_s2] ss:$0 sm:$0xff]  ;;  %v1280_v56 = vpop.f32.mrf.mxu3 }
 0x103   : > { %v2557_v21 = vadd.f32 %v719_v39, %v568_v19 }
 0x108   : > { %v1052_v26 = vpop.f32.mrf.mxu1  ;;  %v1384_v29 = vpop.f32.mrf.mxu0 }
 0x109   : > { %v1072_v51 = vadd.f32 %v1052_v26, %v957_v15  ;;  %v1164_v31 = vpop.f32.mrf.mxu2  ;;  %v1282_v8 = vpop.f32.mrf.mxu3 }
 0x10b   : > { %v1177_v42 = vadd.f32 %v1157_v35, %v1072_v51 }
 0x10d   : > { %v1295_v11 = vadd.f32 %v1275_v25, %v1177_v42 }
 0x10f   : > { %v1404_v63 = vadd.f32 %v1384_v29, %v1295_v11 }
 0x110   : > { %v1054_v3 = vpop.f32.mrf.mxu1  ;;  %v1386_v27 = vpop.f32.mrf.mxu0 }
 0x111   : > { %v1073_v32 = vadd.f32 %v1054_v3, %v958_v17  ;;  %v1167_v34 = vpop.f32.mrf.mxu2  ;;  %v1416_v18 = vadd.f32 %v2563_v7, %v1404_v63  ;;  %v1285_v41 = vpop.f32.mrf.mxu3 }
 0x113   : > { %v1178_v1 = vadd.f32 %v1159_v59, %v1073_v32  ;;  %v1453_v20 = vmul.f32 %v1416_v18, %v1416_v18 }
 0x115   : > { %v1296_v15 = vadd.f32 %v1277_v22, %v1178_v1 }
 0x117   : > { %v1405_v13 = vadd.f32 %v1386_v27, %v1296_v15 }
 0x118   : > { %v1057_v36 = vpop.f32.mrf.mxu1  ;;  %v1389_v38 = vpop.f32.mrf.mxu0 }
 0x119   : > { %v1417_v37 = vadd.f32 %v2563_v7, %v1405_v13  ;;  %v1074_v43 = vadd.f32 %v1057_v36, %v959_v10  ;;  %v1169_v57 = vpop.f32.mrf.mxu2  ;;  %v960_v10 = vadd.f32 %v2539_v48, %v836_v44  ;;  %v1287_v11 = vpop.f32.mrf.mxu3 }
 0x11b   : > { %v1948_v46 = vpack.c.bf16 %v1417_v37, %v1416_v18  ;;  %v1440_v28 = vadd.f32 %v1417_v37, %v1416_v18  ;;  %v1454_v23 = vmul.f32 %v1417_v37, %v1417_v37  ;;  %v1179_v62 = vadd.f32 %v1162_v40, %v1074_v43 }
 0x11c   : > { %v838_v40 = vadd.f32 %v2537_v53, %v2547_v4  ;;  %v839_v53 = vadd.f32 %v2541_v24, %v2553_v6 }
 0x11d   : > { %1949 = vst [vmem:[%s2572_s30] sm:$0xff] %v1948_v46   ;;  %v1461_v14 = vadd.f32 %v1454_v23, %v1453_v20  ;;  %v1297_v2 = vadd.f32 %v1280_v56, %v1179_v62 }
 0x11e   : > { %v962_v33 = vadd.f32 %v2545_v52, %v838_v40  ;;  %v963_v15 = vadd.f32 %v2551_v60, %v839_v53 }
 0x11f   : > { %v1406_v39 = vadd.f32 %v1389_v38, %v1297_v2  ;;  %v840_v38 = vadd.f32 %v2549_v55, %v2557_v21 }
 0x120   : > { %v1059_v9 = vpop.f32.mrf.mxu1  ;;  %v1391_v12 = vpop.f32.mrf.mxu0 }
 0x121   : > { %v1418_v0 = vadd.f32 %v2563_v7, %v1406_v39  ;;  %v1075_v5 = vadd.f32 %v1059_v9, %v960_v10  ;;  %v1172_v61 = vpop.f32.mrf.mxu2  ;;  %v1290_v37 = vpop.f32.mrf.mxu3  ;;  %v964_v23 = vadd.f32 %v2555_v16, %v840_v38 }
 0x123   : > { %v1441_v58 = vadd.f32 %v1440_v28, %v1418_v0  ;;  %v1455_v54 = vmul.f32 %v1418_v0, %v1418_v0  ;;  %v1180_v47 = vadd.f32 %v1164_v31, %v1075_v5 }
 0x125   : > { %v1462_v35 = vadd.f32 %v1461_v14, %v1455_v54  ;;  %v1298_v50 = vadd.f32 %v1282_v8, %v1180_v47 }
 0x127   : > { %v1407_v59 = vadd.f32 %v1391_v12, %v1298_v50 }
 0x128   : > { %v1062_v45 = vpop.f32.mrf.mxu1  ;;  %v1394_v30 = vpop.f32.mrf.mxu0 }
 0x129   : > { %v1419_v25 = vadd.f32 %v2563_v7, %v1407_v59  ;;  %v1076_v48 = vadd.f32 %v1062_v45, %v2543_v49  ;;  %v1174_v49 = vpop.f32.mrf.mxu2  ;;  %v1292_v21 = vpop.f32.mrf.mxu3 }
 0x12b   : > { %v1953_v19 = vpack.c.bf16 %v1419_v25, %v1418_v0  ;;  %v1442_v22 = vadd.f32 %v1441_v58, %v1419_v25  ;;  %v1456_v26 = vmul.f32 %v1419_v25, %v1419_v25  ;;  %v1181_v29 = vadd.f32 %v1167_v34, %v1076_v48 }
 0x12d   : > { %1965 = vst [vmem:[%s2572_s30 + $0x8] sm:$0xff] %v1953_v19   ;;  %v1463_v51 = vadd.f32 %v1462_v35, %v1456_v26  ;;  %v1299_v31 = vadd.f32 %v1285_v41, %v1181_v29 }
 0x12f   : > { %v1408_v42 = vadd.f32 %v1394_v30, %v1299_v31 }
 0x130   : > { %v1064_v17 = vpop.f32.mrf.mxu1  ;;  %v1396_v56 = vpop.f32.mrf.mxu0 }
 0x131   : > { %v1420_v3 = vadd.f32 %v2563_v7, %v1408_v42  ;;  %v1077_v27 = vadd.f32 %v1064_v17, %v962_v33  ;;  %v1399_v20 = vpop.f32.mrf.mxu2 }
 0x133   : > { %v1443_v4 = vadd.f32 %v1442_v22, %v1420_v3  ;;  %v1457_v32 = vmul.f32 %v1420_v3, %v1420_v3  ;;  %v1182_v63 = vadd.f32 %v1169_v57, %v1077_v27 }
 0x135   : > { %v1464_v1 = vadd.f32 %v1463_v51, %v1457_v32  ;;  %v1300_v34 = vadd.f32 %v1287_v11, %v1182_v63 }
 0x137   : > { %v1409_v52 = vadd.f32 %v1396_v56, %v1300_v34 }
 0x138   : > { %v1067_v18 = vpop.f32.mrf.mxu1 }
 0x139   : > { %v1421_v13 = vadd.f32 %v2563_v7, %v1409_v52  ;;  %v1078_v36 = vadd.f32 %v1067_v18, %v963_v15  ;;  %v1401_v9 = vpop.f32.mrf.mxu2 }
 0x13b   : > { %v1958_v43 = vpack.c.bf16 %v1421_v13, %v1420_v3  ;;  %v1444_v24 = vadd.f32 %v1443_v4, %v1421_v13  ;;  %v1458_v6 = vmul.f32 %v1421_v13, %v1421_v13  ;;  %v1183_v44 = vadd.f32 %v1172_v61, %v1078_v36 }
 0x13d   : > { %1966 = vst [vmem:[%s2572_s30 + $0x10] sm:$0xff] %v1958_v43   ;;  %v1465_v46 = vadd.f32 %v1464_v1, %v1458_v6  ;;  %v1301_v28 = vadd.f32 %v1290_v37, %v1183_v44 }
 0x13f   : > { %v1410_v60 = vadd.f32 %v1399_v20, %v1301_v28 }
 0x140   : > { %v1069_v62 = vpop.f32.mrf.mxu1 }
 0x141   : > { %v1422_v8 = vadd.f32 %v2563_v7, %v1410_v60  ;;  %v1079_v14 = vadd.f32 %v1069_v62, %v964_v23 }
 0x143   : > { %v1445_v2 = vadd.f32 %v1444_v24, %v1422_v8  ;;  %v1459_v57 = vmul.f32 %v1422_v8, %v1422_v8  ;;  %v1184_v55 = vadd.f32 %v1174_v49, %v1079_v14 }
 0x145   : > { %v1466_v10 = vadd.f32 %v1465_v46, %v1459_v57  ;;  %v1302_v39 = vadd.f32 %v1292_v21, %v1184_v55 }
 0x147   : > { %v1411_v12 = vadd.f32 %v1401_v9, %v1302_v39 }
 0x149   : > { %v1423_v0 = vadd.f32 %v2563_v7, %v1411_v12 }
 0x14b   : > { %v1963_v5 = vpack.c.bf16 %v1423_v0, %v1422_v8  ;;  %v1446_v58 = vadd.f32 %v1445_v2, %v1423_v0  ;;  %v1460_v16 = vmul.f32 %v1423_v0, %v1423_v0 }
 0x14d   : > { %1967 = vst [vmem:[%s2572_s30 + $0x18] sm:$0xff] %v1963_v5   ;;  %v1447_v54 = vrot.slane %v1446_v58, 4  ;;  %v1467_v47 = vadd.f32 %v1466_v10, %v1460_v16 }
 0x14f   : > { %v1448_v35 = vadd.f32 %v1447_v54, %v1446_v58  ;;  %v1468_v50 = vrot.slane %v1467_v47, 4 }
 0x151   : > { %v1449_v41 = vrot.slane %v1448_v35, 2  ;;  %v1469_v59 = vadd.f32 %v1468_v50, %v1467_v47 }
 0x153   : > { %v1450_v61 = vadd.f32 %v1449_v41, %v1448_v35  ;;  %v1470_v45 = vrot.slane %v1469_v59, 2 }
 0x155   : > { %v1451_v25 = vrot.slane %v1450_v61, 1  ;;  %v1471_v48 = vadd.f32 %v1470_v45, %v1469_v59 }
 0x157   : > { %v1472_v40 = vrot.slane %v1471_v48, 1  ;;  %v1452_v7 = vadd.f32 %v1451_v25, %v1450_v61 }
 0x159   : > { %v1473_v30 = vadd.f32 %v1472_v40, %v1471_v48 }
 0x15b   : > { %v1475_v19 = vsel %vm1474_vm6, %v1452_v7, %v1473_v30 }
 0x15c   : > { %1476 = vst [vmem:[%s208_s8] sm:$0x3] %v1475_v19 }
 0x15d PF: > { %s15_s15 = sadd.s32 1, %s2000_s15  }
 0x15e   : > { %p12_p4 = scmp.ge.s32.totalorder %s15_s15, 4  }
 0x160   :  { %14 = sbr.rel (!%p12_p4) target bundleno = 1 (0x1), region = 74 }

</bundles_post_ra>
